<compile_context>
chip_gen: v7x
topology: tpu7x:2x2x1
jax: 0.10.0
libtpu: 0.0.40
codegen_flags: <defaults>
</compile_context>

<pallas_src>
import jax
import jax.numpy as jnp
from jax.experimental import pallas as pl
from jax.experimental.pallas import tpu as pltpu

# ---------------------------------------------------------------------------
# Synthetic auction-game structure (small, deterministic)
# ---------------------------------------------------------------------------
NUM_PLAYERS = 4
FORWARDS_NEEDED = 2
DEFENSEMEN_NEEDED = 2
GOALIES_NEEDED = 1
NUM_OPP = NUM_PLAYERS - 1
OPP_HIDDEN = 16
L_FWD = NUM_PLAYERS * FORWARDS_NEEDED      # 8
L_DEF = NUM_PLAYERS * DEFENSEMEN_NEEDED    # 8
L_GOAL = NUM_PLAYERS * GOALIES_NEEDED      # 4
NSEQ = L_FWD + L_DEF + L_GOAL              # 20
IN_ROWS = 1 + NSEQ                         # 1 dense row + 20 sequence rows
MERGED_DIM = 32 + 16 + 32 + 96             # 176, as in the PyTorch module
BATCH = 2
TB = 8                                     # batch tile (raise + re-pack biases for throughput)

# Parameter storage layouts (kernel-friendly):
#   Linear weights: (in, out);  biases: (1, out)
#   Conv1 weights:  (3, 16)   [k, out_ch]
#   Conv2 weights:  (48, 32)  [16*k + in_ch, out_ch]
PARAM_SHAPES = {
    'wg1': (8, 64), 'bg1': (1, 64), 'wg2': (64, 32), 'bg2': (1, 32),
    'wo1': (5, 32), 'bo1': (1, 32), 'wo2': (32, 16), 'bo2': (1, 16),
    'wos': (5, OPP_HIDDEN), 'bos': (1, OPP_HIDDEN),
    'wob': (NUM_OPP * OPP_HIDDEN, 32), 'bob': (1, 32),
    'wpf1': (3, 16), 'bpf1': (1, 16), 'wpf2': (48, 32), 'bpf2': (1, 32),
    'wpd1': (3, 16), 'bpd1': (1, 16), 'wpd2': (48, 32), 'bpd2': (1, 32),
    'wpg1': (3, 16), 'bpg1': (1, 16), 'wpg2': (48, 32), 'bpg2': (1, 32),
    'wm1': (MERGED_DIM, 128), 'bm1': (1, 128),
    'wm2': (128, 128), 'bm2': (1, 128),
    'wm3': (128, 128), 'bm3': (1, 128),
    'wm4': (128, 128), 'bm4': (1, 128),
    'wp1': (128, 64), 'bp1': (1, 64), 'wp2': (64, 2), 'bp2': (1, 2),
    'wv1': (128, 64), 'bv1': (1, 64), 'wv2': (64, NUM_PLAYERS), 'bv2': (1, NUM_PLAYERS),
}


def init_params(seed=0):
    key = jax.random.PRNGKey(seed)
    params = {}
    for i, (name, shape) in enumerate(PARAM_SHAPES.items()):
        k = jax.random.fold_in(key, i)
        if name.startswith('w'):
            scale = 1.0 / (float(sum(shape)) ** 0.5)
        else:
            scale = 0.05
        params[name] = jax.random.normal(k, shape, jnp.float32) * scale
    return params


# ---------------------------------------------------------------------------
# Static slab layout.  Every block row-count is a multiple of 16 so the bf16
# sublane tiling stays aligned; rows beyond the true K of each layer are zero.
# ---------------------------------------------------------------------------
_W_ENTRIES = [
    ('d1g', 32), ('d1oq', 32), ('d2g', 64), ('d2oq', 128),
    ('c1f0', 16), ('c1f1', 16), ('c1f2', 16),
    ('c1d0', 16), ('c1d1', 16), ('c1d2', 16),
    ('c1g0', 16), ('c1g1', 16), ('c1g2', 16),
    ('c2f0', 16), ('c2f1', 16), ('c2f2', 16),
    ('c2d0', 16), ('c2d1', 16), ('c2d2', 16),
    ('c2g0', 16), ('c2g1', 16), ('c2g2', 16),
    ('m1d', 128), ('m1p', 128), ('m2', 128), ('m3', 128), ('m4', 128),
    ('h1', 128), ('h2', 128),
]
W_OFF = {}
_off = 0
for _n, _r in _W_ENTRIES:
    W_OFF[_n] = (_off, _r)
    _off += _r
W_ROWS = _off                                   # 1440 rows -> ~360 KiB bf16

B_NAMES = ['d1g', 'd1oq', 'd2',
           'c1f', 'c1d', 'c1g', 'c2f', 'c2d', 'c2g',
           'm1', 'm2', 'm3', 'm4', 'h1', 'h2']
B_IDX = {n: i for i, n in enumerate(B_NAMES)}
B_ROWS = len(B_NAMES)


# ---------------------------------------------------------------------------
# The Pallas kernel: entire forward pass for one batch tile of TB rows
# ---------------------------------------------------------------------------
def auction_kernel(inp_ref, w_ref, b_ref, out_ref):
    f32, bf16 = jnp.float32, jnp.bfloat16
    tb = out_ref.shape[0]

    def wblk(name):
        off, rows = W_OFF[name]
        return w_ref[off:off + rows, :]             # (rows, 128) bf16

    def bias(name):
        return b_ref[B_IDX[name]]                   # (TB, 128) f32, pre-broadcast

    def mm(act, name):
        return jnp.dot(act.astype(bf16), wblk(name), preferred_element_type=f32)

    def relu(t):
        return jnp.maximum(t, 0.0)

    # Single aligned input DMA: row 0 = dense features, rows 1:21 = pool seqs.
    flat = inp_ref[...].reshape(IN_ROWS * tb, 128)  # collapse (rows, TB) -> sublanes
    xd = flat[0:tb]                                 # (TB, 128) dense features (lanes 0:28)

    # ---- fused dense branches (2 matmuls per layer instead of 3) ----------
    x32 = xd[:, 0:32]
    g1 = relu(mm(x32, 'd1g') + bias('d1g'))         # lanes 0:64  global hidden
    oq1 = relu(mm(x32, 'd1oq') + bias('d1oq'))      # lanes 0:32 our hid | 32:80 opp hid
    # layer-2 outputs land in disjoint lanes -> one relu gives the merged feature
    dfeat = relu(mm(g1[:, 0:64], 'd2g') + mm(oq1, 'd2oq') + bias('d2'))
    # dfeat lanes: 0:32 global_feat | 32:48 our_feat | 48:80 opp_feat

    # ---- pool branches: Conv1d(1->16,k3,p1) + Conv1d(16->32,k3,p1) + max --
    def shift_dn(a):        # row (l,b) <- value of (l-1,b); zeros at l == 0
        z = jnp.zeros((tb,) + a.shape[1:], a.dtype)
        return jnp.concatenate([z, a[:-tb]], axis=0)

    def shift_up(a):        # row (l,b) <- value of (l+1,b); zeros at l == L-1
        z = jnp.zeros((tb,) + a.shape[1:], a.dtype)
        return jnp.concatenate([a[tb:], z], axis=0)

    def pool_branch(seq_off, L, tag):
        # rows are l-major (row = l*TB + b) so taps are 8-row-aligned shifts
        assert (L & (L - 1)) == 0, "halving max-pool needs power-of-two length"
        r0 = (1 + seq_off) * tb
        n = L * tb
        xs = flat[r0:r0 + n, 0:16]                  # raw value in lane 0, rest zero
        # Conv1 as 3 accumulated matmuls (taps = in-kernel row shifts)
        h1c = relu(mm(shift_dn(xs), 'c1' + tag + '0')
                   + mm(xs, 'c1' + tag + '1')
                   + mm(shift_up(xs), 'c1' + tag + '2')
                   + bias('c1' + tag)[0:1, :])      # (n, 128), true lanes 0:16
        hc = h1c[:, 0:16]
        # Conv2 as 3 accumulated matmuls, output at branch-specific lane window
        y = relu(mm(shift_dn(hc), 'c2' + tag + '0')
                 + mm(hc, 'c2' + tag + '1')
                 + mm(shift_up(hc), 'c2' + tag + '2')
                 + bias('c2' + tag)[0:1, :])        # (n, 128)
        # AdaptiveMaxPool1d(1): halving max (rows stay (l,b)-paired per batch)
        while n > tb:
            n //= 2
            y = jnp.maximum(y[:n], y[n:2 * n])
        return y                                    # (TB, 128)

    pool = (pool_branch(0, L_FWD, 'f')
            + pool_branch(L_FWD, L_DEF, 'd')
            + pool_branch(L_FWD + L_DEF, L_GOAL, 'g'))
    # pool lanes: 0:32 forward | 32:64 defense | 64:96 goalie

    # ---- merged trunk: 176-wide concat collapses to 2 row-block matmuls ----
    m = relu(mm(dfeat, 'm1d') + mm(pool, 'm1p') + bias('m1'))
    m = relu(mm(m, 'm2') + bias('m2'))
    m = relu(mm(m, 'm3') + bias('m3'))
    m = relu(mm(m, 'm4') + bias('m4'))              # (TB, 128)

    # ---- fused policy / value heads ----------------------------------------
    hh = relu(mm(m, 'h1') + bias('h1'))             # 0:64 policy hidden, 64:128 value hidden
    z = mm(hh, 'h2') + bias('h2')                   # lanes 0:2 pi logits, 2:6 v logits

    pi = z[:, 0:2]
    pim = pi - jnp.max(pi, axis=-1, keepdims=True)
    logpi = pim - jnp.log(jnp.sum(jnp.exp(pim), axis=-1, keepdims=True))

    vz = z[:, 2:2 + NUM_PLAYERS]
    ve = jnp.exp(vz - jnp.max(vz, axis=-1, keepdims=True))
    v = ve * pl.reciprocal(jnp.sum(ve, axis=-1, keepdims=True), approx=False)

    # full-tile (TB,128) unmasked store
    out_ref[...] = jnp.concatenate(
        [logpi, v, jnp.zeros((tb, 128 - 2 - NUM_PLAYERS), f32)], axis=1)


# ---------------------------------------------------------------------------
# Host-side packing: params -> bf16 weight slab + f32 bias slab (done ONCE)
# ---------------------------------------------------------------------------
def pack_params(p):
    f32 = jnp.float32
    W = jnp.zeros((W_ROWS, 128), f32)

    def put(W, name, r0, c0, mat):
        off, rows = W_OFF[name]
        m = jnp.asarray(mat, f32)
        r, c = m.shape
        assert r0 + r <= rows and c0 + c <= 128
        return W.at[off + r0:off + r0 + r, c0:c0 + c].set(m)

    # layer 1 (both blocks contract dense lanes 0:32; unused rows stay zero)
    W = put(W, 'd1g', 0, 0, p['wg1'])                       # global -> lanes 0:64
    W = put(W, 'd1oq', 8, 0, p['wo1'])                      # our    -> lanes 0:32
    for j in range(NUM_OPP):                                # shared opp layer, block-diag
        W = put(W, 'd1oq', 13 + 5 * j, 32 + OPP_HIDDEN * j, p['wos'])
    # layer 2 (disjoint output lanes)
    W = put(W, 'd2g', 0, 0, p['wg2'])                       # global_feat  lanes 0:32
    W = put(W, 'd2oq', 0, 32, p['wo2'])                     # our_feat     lanes 32:48
    W = put(W, 'd2oq', 32, 48, p['wob'])                    # opp_feat     lanes 48:80
    # conv branches: tap-k sub-blocks; branch-specific output lane windows
    for tag, pre, c0 in (('f', 'pf', 0), ('d', 'pd', 32), ('g', 'pg', 64)):
        w1, w2 = p['w' + pre + '1'], p['w' + pre + '2']
        for k in range(3):
            W = put(W, 'c1' + tag + str(k), 0, 0, w1[k:k + 1, :])
            W = put(W, 'c2' + tag + str(k), 0, c0, w2[16 * k:16 * k + 16, :])
    # merged trunk (wm1 split into dense-feature rows and pool-feature rows)
    W = put(W, 'm1d', 0, 0, p['wm1'][0:80, :])
    W = put(W, 'm1p', 0, 0, p['wm1'][80:176, :])
    W = put(W, 'm2', 0, 0, p['wm2'])
    W = put(W, 'm3', 0, 0, p['wm3'])
    W = put(W, 'm4', 0, 0, p['wm4'])
    # fused heads
    W = put(W, 'h1', 0, 0, p['wp1'])
    W = put(W, 'h1', 0, 64, p['wv1'])
    W = put(W, 'h2', 0, 0, p['wp2'])
    W = put(W, 'h2', 64, 2, p['wv2'])

    Bm = jnp.zeros((B_ROWS, 128), f32)

    def putb(Bm, name, c0, vec):
        v = jnp.asarray(vec, f32).reshape(-1)
        return Bm.at[B_IDX[name], c0:c0 + v.shape[0]].set(v)

    Bm = putb(Bm, 'd1g', 0, p['bg1'])
    Bm = putb(Bm, 'd1oq', 0, p['bo1'])
    Bm = putb(Bm, 'd1oq', 32, jnp.tile(p['bos'], (1, NUM_OPP)))
    Bm = putb(Bm, 'd2', 0, p['bg2'])
    Bm = putb(Bm, 'd2', 32, p['bo2'])
    Bm = putb(Bm, 'd2', 48, p['bob'])
    for tag, pre, c0 in (('f', 'pf', 0), ('d', 'pd', 32), ('g', 'pg', 64)):
        Bm = putb(Bm, 'c1' + tag, 0, p['b' + pre + '1'])
        Bm = putb(Bm, 'c2' + tag, c0, p['b' + pre + '2'])
    Bm = putb(Bm, 'm1', 0, p['bm1'])
    Bm = putb(Bm, 'm2', 0, p['bm2'])
    Bm = putb(Bm, 'm3', 0, p['bm3'])
    Bm = putb(Bm, 'm4', 0, p['bm4'])
    Bm = putb(Bm, 'h1', 0, p['bp1'])
    Bm = putb(Bm, 'h1', 64, p['bv1'])
    Bm = putb(Bm, 'h2', 0, p['bp2'])
    Bm = putb(Bm, 'h2', 2, p['bv2'])

    # pre-broadcast every bias row to TB sublanes -> broadcast-free adds in-kernel
    Bm = jnp.tile(Bm[:, None, :], (1, TB, 1))               # (B_ROWS, TB, 128)
    return W.astype(jnp.bfloat16), Bm


# ---------------------------------------------------------------------------
# Host-side input packing: one lane/sublane-aligned slab per forward call
# ---------------------------------------------------------------------------
def pack_inputs(state, b_pad):
    f32 = jnp.float32
    B = state['global'].shape[0]
    dense = jnp.concatenate([
        state['global'].astype(f32),                        # lanes 0:8
        state['our'].astype(f32),                           # lanes 8:13
        state['opponents'].astype(f32).reshape(B, -1),      # lanes 13:28
    ], axis=1)                                              # (B, 28)
    seqs = jnp.concatenate([state['pool_forward'], state['pool_defense'],
                            state['pool_goalie']], axis=1).astype(f32)   # (B, 20)
    dense_row = jnp.pad(dense, ((0, b_pad - B), (0, 128 - dense.shape[1])))[None]
    seq_rows = jnp.pad(seqs.T[:, :, None], ((0, 0), (0, b_pad - B), (0, 127)))
    return jnp.concatenate([dense_row, seq_rows], axis=0)   # (IN_ROWS, B_pad, 128)


def auction_env_net_pallas(state, w_slab, b_slab):
    B = state['global'].shape[0]
    n_tiles = pl.cdiv(B, TB)
    b_pad = n_tiles * TB
    inp = pack_inputs(state, b_pad)
    out = pl.pallas_call(
        auction_kernel,
        out_shape=jax.ShapeDtypeStruct((b_pad, 128), jnp.float32),
        grid=(n_tiles,),
        in_specs=[
            pl.BlockSpec((IN_ROWS, TB, 128), lambda i: (0, i, 0)),   # per-tile activations
            pl.BlockSpec((W_ROWS, 128), lambda i: (0, 0)),           # weights: VMEM-resident
            pl.BlockSpec((B_ROWS, TB, 128), lambda i: (0, 0, 0)),    # biases:  VMEM-resident
        ],
        out_specs=pl.BlockSpec((TB, 128), lambda i: (i, 0)),
        compiler_params=pltpu.CompilerParams(
            dimension_semantics=("parallel",)),                      # 2-TC sharding on v7x
    )(inp, w_slab, b_slab)
    return out[:B, 0:2], out[:B, 2:2 + NUM_PLAYERS]


# ---------------------------------------------------------------------------
# Pure-JAX reference (for correctness check only)
# ---------------------------------------------------------------------------
def _ref_pool(x, w1, b1, w2, b2):
    xin = x[:, None, :]                                       # (B, 1, L)
    k1 = jnp.transpose(w1)[:, None, :]                        # (16, 1, 3) OIH
    h = jax.lax.conv_general_dilated(xin, k1, (1,), [(1, 1)],
                                     dimension_numbers=('NCH', 'OIH', 'NCH'))
    h = jax.nn.relu(h + b1[0][None, :, None])
    k2 = jnp.transpose(w2.reshape(3, 16, 32), (2, 1, 0))      # (32, 16, 3) OIH
    h2 = jax.lax.conv_general_dilated(h, k2, (1,), [(1, 1)],
                                      dimension_numbers=('NCH', 'OIH', 'NCH'))
    h2 = jax.nn.relu(h2 + b2[0][None, :, None])
    return jnp.max(h2, axis=-1)                               # (B, 32)


def reference_forward(state, params):
    p = params
    relu = jax.nn.relu
    lin = lambda x, w, b: x @ w + b[0]
    g = relu(lin(relu(lin(state['global'], p['wg1'], p['bg1'])), p['wg2'], p['bg2']))
    o = relu(lin(relu(lin(state['our'], p['wo1'], p['bo1'])), p['wo2'], p['bo2']))
    opp = state['opponents']
    Bsz = opp.shape[0]
    oh = relu(jnp.einsum('bjc,cd->bjd', opp, p['wos']) + p['bos'][0])
    of = relu(lin(oh.reshape(Bsz, NUM_OPP * OPP_HIDDEN), p['wob'], p['bob']))
    pf = _ref_pool(state['pool_forward'], p['wpf1'], p['bpf1'], p['wpf2'], p['bpf2'])
    pd = _ref_pool(state['pool_defense'], p['wpd1'], p['bpd1'], p['wpd2'], p['bpd2'])
    pg = _ref_pool(state['pool_goalie'], p['wpg1'], p['bpg1'], p['wpg2'], p['bpg2'])
    merged = jnp.concatenate([g, o, of, pf, pd, pg], axis=-1)
    m = relu(lin(merged, p['wm1'], p['bm1']))
    m = relu(lin(m, p['wm2'], p['bm2']))
    m = relu(lin(m, p['wm3'], p['bm3']))
    m = relu(lin(m, p['wm4'], p['bm4']))
    pi = lin(relu(lin(m, p['wp1'], p['bp1'])), p['wp2'], p['bp2'])
    v = lin(relu(lin(m, p['wv1'], p['bv1'])), p['wv2'], p['bv2'])
    return jax.nn.log_softmax(pi, axis=1), jax.nn.softmax(v, axis=1)


if __name__ == "__main__":
    params = init_params(seed=0)
    key = jax.random.PRNGKey(0)
    ks = jax.random.split(key, 6)
    state = {
        'global':       jax.random.normal(ks[0], (BATCH, 8), jnp.float32),
        'our':          jax.random.normal(ks[1], (BATCH, 5), jnp.float32),
        'opponents':    jax.random.normal(ks[2], (BATCH, NUM_OPP, 5), jnp.float32),
        'pool_forward': jax.random.normal(ks[3], (BATCH, L_FWD), jnp.float32),
        'pool_defense': jax.random.normal(ks[4], (BATCH, L_DEF), jnp.float32),
        'pool_goalie':  jax.random.normal(ks[5], (BATCH, L_GOAL), jnp.float32),
    }

    w_slab, b_slab = pack_params(params)        # one-time parameter packing (bf16 weights)
    fwd = jax.jit(auction_env_net_pallas)
    log_pi, v = fwd(state, w_slab, b_slab)
    jax.block_until_ready((log_pi, v))

    ref_log_pi, ref_v = reference_forward(state, params)
    assert log_pi.shape == (BATCH, 2) and v.shape == (BATCH, NUM_PLAYERS)
    # tolerance widened slightly vs the f32 version because weights are bf16
    assert jnp.allclose(log_pi, ref_log_pi, atol=2e-2, rtol=2e-2)
    assert jnp.allclose(v, ref_v, atol=2e-2, rtol=2e-2)
    print("KERNEL_OK")
</pallas_src>

<mosaic_0001>
module attributes {stable_mosaic.version = 11 : i64} {
  func.func @auction_kernel(%arg0: i32, %arg1: memref<21x8x128xf32, #tpu.memory_space<vmem>>, %arg2: memref<1440x128xbf16, #tpu.memory_space<vmem>>, %arg3: memref<15x8x128xf32, #tpu.memory_space<vmem>>, %arg4: memref<8x128xf32, #tpu.memory_space<vmem>>) attributes {dimension_semantics = [#tpu.dimension_semantics<parallel>], iteration_bounds = array<i64: 1>, scalar_prefetch = 0 : i64, scratch_operands = 0 : i64, tpu.core_type = #tpu.core_type<tc>, window_params = [{transform_indices = @transform_0, window_bounds = array<i64: 21, 8, 128>}, {pipeline_mode = #tpu.pipeline_mode<synchronous>, transform_indices = @transform_1, window_bounds = array<i64: 1440, 128>}, {pipeline_mode = #tpu.pipeline_mode<synchronous>, transform_indices = @transform_2, window_bounds = array<i64: 15, 8, 128>}, {transform_indices = @transform_3, window_bounds = array<i64: 8, 128>}]} {
    %c0 = arith.constant 0 : index
    %c0_0 = arith.constant 0 : index
    %c0_1 = arith.constant 0 : index
    %0 = vector.load %arg1[%c0, %c0_0, %c0_1] : memref<21x8x128xf32, #tpu.memory_space<vmem>>, vector<21x8x128xf32>
    %1 = vector.shape_cast %0 : vector<21x8x128xf32> to vector<168x128xf32>
    %2 = vector.extract_strided_slice %1 {offsets = [0, 0], sizes = [8, 128], strides = [1, 1]} : vector<168x128xf32> to vector<8x128xf32>
    %3 = vector.extract_strided_slice %2 {offsets = [0, 0], sizes = [8, 32], strides = [1, 1]} : vector<8x128xf32> to vector<8x32xf32>
    %4 = arith.truncf %3 : vector<8x32xf32> to vector<8x32xbf16>
    %c0_2 = arith.constant 0 : index
    %c0_3 = arith.constant 0 : index
    %5 = vector.load %arg2[%c0_2, %c0_3] : memref<1440x128xbf16, #tpu.memory_space<vmem>>, vector<32x128xbf16>
    %cst = arith.constant dense<0.000000e+00> : vector<8x128xf32>
    %6 = tpu.matmul %4, %5, %cst {dimension_numbers = #tpu.dot_dimension_numbers<[1], [0], [0], [1], [0, 0, 1, 1], [], []>} : vector<8x32xbf16>, vector<32x128xbf16>, vector<8x128xf32> -> vector<8x128xf32>
    %c0_4 = arith.constant 0 : index
    %c0_5 = arith.constant 0 : index
    %c0_6 = arith.constant 0 : index
    %7 = vector.load %arg3[%c0_4, %c0_5, %c0_6] : memref<15x8x128xf32, #tpu.memory_space<vmem>>, vector<1x8x128xf32>
    %8 = vector.shape_cast %7 : vector<1x8x128xf32> to vector<8x128xf32>
    %9 = arith.addf %6, %8 : vector<8x128xf32>
    %cst_7 = arith.constant 0.000000e+00 : f32
    %10 = vector.broadcast %cst_7 : f32 to vector<8x128xf32>
    %11 = arith.maximumf %9, %10 : vector<8x128xf32>
    %12 = arith.truncf %3 : vector<8x32xf32> to vector<8x32xbf16>
    %c32 = arith.constant 32 : index
    %c0_8 = arith.constant 0 : index
    %13 = vector.load %arg2[%c32, %c0_8] : memref<1440x128xbf16, #tpu.memory_space<vmem>>, vector<32x128xbf16>
    %cst_9 = arith.constant dense<0.000000e+00> : vector<8x128xf32>
    %14 = tpu.matmul %12, %13, %cst_9 {dimension_numbers = #tpu.dot_dimension_numbers<[1], [0], [0], [1], [0, 0, 1, 1], [], []>} : vector<8x32xbf16>, vector<32x128xbf16>, vector<8x128xf32> -> vector<8x128xf32>
    %c1 = arith.constant 1 : index
    %c0_10 = arith.constant 0 : index
    %c0_11 = arith.constant 0 : index
    %15 = vector.load %arg3[%c1, %c0_10, %c0_11] : memref<15x8x128xf32, #tpu.memory_space<vmem>>, vector<1x8x128xf32>
    %16 = vector.shape_cast %15 : vector<1x8x128xf32> to vector<8x128xf32>
    %17 = arith.addf %14, %16 : vector<8x128xf32>
    %cst_12 = arith.constant 0.000000e+00 : f32
    %18 = vector.broadcast %cst_12 : f32 to vector<8x128xf32>
    %19 = arith.maximumf %17, %18 : vector<8x128xf32>
    %20 = vector.extract_strided_slice %11 {offsets = [0, 0], sizes = [8, 64], strides = [1, 1]} : vector<8x128xf32> to vector<8x64xf32>
    %21 = arith.truncf %20 : vector<8x64xf32> to vector<8x64xbf16>
    %c64 = arith.constant 64 : index
    %c0_13 = arith.constant 0 : index
    %22 = vector.load %arg2[%c64, %c0_13] : memref<1440x128xbf16, #tpu.memory_space<vmem>>, vector<64x128xbf16>
    %cst_14 = arith.constant dense<0.000000e+00> : vector<8x128xf32>
    %23 = tpu.matmul %21, %22, %cst_14 {dimension_numbers = #tpu.dot_dimension_numbers<[1], [0], [0], [1], [0, 0, 1, 1], [], []>} : vector<8x64xbf16>, vector<64x128xbf16>, vector<8x128xf32> -> vector<8x128xf32>
    %24 = arith.truncf %19 : vector<8x128xf32> to vector<8x128xbf16>
    %c128 = arith.constant 128 : index
    %c0_15 = arith.constant 0 : index
    %25 = vector.load %arg2[%c128, %c0_15] : memref<1440x128xbf16, #tpu.memory_space<vmem>>, vector<128x128xbf16>
    %cst_16 = arith.constant dense<0.000000e+00> : vector<8x128xf32>
    %26 = tpu.matmul %24, %25, %cst_16 {dimension_numbers = #tpu.dot_dimension_numbers<[1], [0], [0], [1], [0, 0, 1, 1], [], []>} : vector<8x128xbf16>, vector<128x128xbf16>, vector<8x128xf32> -> vector<8x128xf32>
    %27 = arith.addf %23, %26 : vector<8x128xf32>
    %c2 = arith.constant 2 : index
    %c0_17 = arith.constant 0 : index
    %c0_18 = arith.constant 0 : index
    %28 = vector.load %arg3[%c2, %c0_17, %c0_18] : memref<15x8x128xf32, #tpu.memory_space<vmem>>, vector<1x8x128xf32>
    %29 = vector.shape_cast %28 : vector<1x8x128xf32> to vector<8x128xf32>
    %30 = arith.addf %27, %29 : vector<8x128xf32>
    %cst_19 = arith.constant 0.000000e+00 : f32
    %31 = vector.broadcast %cst_19 : f32 to vector<8x128xf32>
    %32 = arith.maximumf %30, %31 : vector<8x128xf32>
    %33 = vector.extract_strided_slice %1 {offsets = [8, 0], sizes = [64, 16], strides = [1, 1]} : vector<168x128xf32> to vector<64x16xf32>
    %cst_20 = arith.constant 0.000000e+00 : f32
    %34 = vector.broadcast %cst_20 : f32 to vector<8x16xf32>
    %35 = vector.extract_strided_slice %33 {offsets = [0, 0], sizes = [56, 16], strides = [1, 1]} : vector<64x16xf32> to vector<56x16xf32>
    %36 = tpu.concatenate %34, %35 in 0 : vector<8x16xf32>, vector<56x16xf32> -> vector<64x16xf32>
    %37 = arith.truncf %36 : vector<64x16xf32> to vector<64x16xbf16>
    %c256 = arith.constant 256 : index
    %c0_21 = arith.constant 0 : index
    %38 = vector.load %arg2[%c256, %c0_21] : memref<1440x128xbf16, #tpu.memory_space<vmem>>, vector<16x128xbf16>
    %cst_22 = arith.constant dense<0.000000e+00> : vector<64x128xf32>
    %39 = tpu.matmul %37, %38, %cst_22 {dimension_numbers = #tpu.dot_dimension_numbers<[1], [0], [0], [1], [0, 0, 1, 1], [], []>} : vector<64x16xbf16>, vector<16x128xbf16>, vector<64x128xf32> -> vector<64x128xf32>
    %40 = arith.truncf %33 : vector<64x16xf32> to vector<64x16xbf16>
    %c272 = arith.constant 272 : index
    %c0_23 = arith.constant 0 : index
    %41 = vector.load %arg2[%c272, %c0_23] : memref<1440x128xbf16, #tpu.memory_space<vmem>>, vector<16x128xbf16>
    %cst_24 = arith.constant dense<0.000000e+00> : vector<64x128xf32>
    %42 = tpu.matmul %40, %41, %cst_24 {dimension_numbers = #tpu.dot_dimension_numbers<[1], [0], [0], [1], [0, 0, 1, 1], [], []>} : vector<64x16xbf16>, vector<16x128xbf16>, vector<64x128xf32> -> vector<64x128xf32>
    %43 = arith.addf %39, %42 : vector<64x128xf32>
    %cst_25 = arith.constant 0.000000e+00 : f32
    %44 = vector.broadcast %cst_25 : f32 to vector<8x16xf32>
    %45 = vector.extract_strided_slice %33 {offsets = [8, 0], sizes = [56, 16], strides = [1, 1]} : vector<64x16xf32> to vector<56x16xf32>
    %46 = tpu.concatenate %45, %44 in 0 : vector<56x16xf32>, vector<8x16xf32> -> vector<64x16xf32>
    %47 = arith.truncf %46 : vector<64x16xf32> to vector<64x16xbf16>
    %c288 = arith.constant 288 : index
    %c0_26 = arith.constant 0 : index
    %48 = vector.load %arg2[%c288, %c0_26] : memref<1440x128xbf16, #tpu.memory_space<vmem>>, vector<16x128xbf16>
    %cst_27 = arith.constant dense<0.000000e+00> : vector<64x128xf32>
    %49 = tpu.matmul %47, %48, %cst_27 {dimension_numbers = #tpu.dot_dimension_numbers<[1], [0], [0], [1], [0, 0, 1, 1], [], []>} : vector<64x16xbf16>, vector<16x128xbf16>, vector<64x128xf32> -> vector<64x128xf32>
    %50 = arith.addf %43, %49 : vector<64x128xf32>
    %c3 = arith.constant 3 : index
    %c0_28 = arith.constant 0 : index
    %c0_29 = arith.constant 0 : index
    %51 = vector.load %arg3[%c3, %c0_28, %c0_29] : memref<15x8x128xf32, #tpu.memory_space<vmem>>, vector<1x8x128xf32>
    %52 = vector.shape_cast %51 : vector<1x8x128xf32> to vector<8x128xf32>
    %53 = vector.extract_strided_slice %52 {offsets = [0, 0], sizes = [1, 128], strides = [1, 1]} : vector<8x128xf32> to vector<1x128xf32>
    %54 = vector.broadcast %53 : vector<1x128xf32> to vector<64x128xf32>
    %55 = arith.addf %50, %54 : vector<64x128xf32>
    %cst_30 = arith.constant 0.000000e+00 : f32
    %56 = vector.broadcast %cst_30 : f32 to vector<64x128xf32>
    %57 = arith.maximumf %55, %56 : vector<64x128xf32>
    %58 = vector.extract_strided_slice %57 {offsets = [0, 0], sizes = [64, 16], strides = [1, 1]} : vector<64x128xf32> to vector<64x16xf32>
    %cst_31 = arith.constant 0.000000e+00 : f32
    %59 = vector.broadcast %cst_31 : f32 to vector<8x16xf32>
    %60 = vector.extract_strided_slice %58 {offsets = [0, 0], sizes = [56, 16], strides = [1, 1]} : vector<64x16xf32> to vector<56x16xf32>
    %61 = tpu.concatenate %59, %60 in 0 : vector<8x16xf32>, vector<56x16xf32> -> vector<64x16xf32>
    %62 = arith.truncf %61 : vector<64x16xf32> to vector<64x16xbf16>
    %c400 = arith.constant 400 : index
    %c0_32 = arith.constant 0 : index
    %63 = vector.load %arg2[%c400, %c0_32] : memref<1440x128xbf16, #tpu.memory_space<vmem>>, vector<16x128xbf16>
    %cst_33 = arith.constant dense<0.000000e+00> : vector<64x128xf32>
    %64 = tpu.matmul %62, %63, %cst_33 {dimension_numbers = #tpu.dot_dimension_numbers<[1], [0], [0], [1], [0, 0, 1, 1], [], []>} : vector<64x16xbf16>, vector<16x128xbf16>, vector<64x128xf32> -> vector<64x128xf32>
    %65 = arith.truncf %58 : vector<64x16xf32> to vector<64x16xbf16>
    %c416 = arith.constant 416 : index
    %c0_34 = arith.constant 0 : index
    %66 = vector.load %arg2[%c416, %c0_34] : memref<1440x128xbf16, #tpu.memory_space<vmem>>, vector<16x128xbf16>
    %cst_35 = arith.constant dense<0.000000e+00> : vector<64x128xf32>
    %67 = tpu.matmul %65, %66, %cst_35 {dimension_numbers = #tpu.dot_dimension_numbers<[1], [0], [0], [1], [0, 0, 1, 1], [], []>} : vector<64x16xbf16>, vector<16x128xbf16>, vector<64x128xf32> -> vector<64x128xf32>
    %68 = arith.addf %64, %67 : vector<64x128xf32>
    %cst_36 = arith.constant 0.000000e+00 : f32
    %69 = vector.broadcast %cst_36 : f32 to vector<8x16xf32>
    %70 = vector.extract_strided_slice %58 {offsets = [8, 0], sizes = [56, 16], strides = [1, 1]} : vector<64x16xf32> to vector<56x16xf32>
    %71 = tpu.concatenate %70, %69 in 0 : vector<56x16xf32>, vector<8x16xf32> -> vector<64x16xf32>
    %72 = arith.truncf %71 : vector<64x16xf32> to vector<64x16xbf16>
    %c432 = arith.constant 432 : index
    %c0_37 = arith.constant 0 : index
    %73 = vector.load %arg2[%c432, %c0_37] : memref<1440x128xbf16, #tpu.memory_space<vmem>>, vector<16x128xbf16>
    %cst_38 = arith.constant dense<0.000000e+00> : vector<64x128xf32>
    %74 = tpu.matmul %72, %73, %cst_38 {dimension_numbers = #tpu.dot_dimension_numbers<[1], [0], [0], [1], [0, 0, 1, 1], [], []>} : vector<64x16xbf16>, vector<16x128xbf16>, vector<64x128xf32> -> vector<64x128xf32>
    %75 = arith.addf %68, %74 : vector<64x128xf32>
    %c6 = arith.constant 6 : index
    %c0_39 = arith.constant 0 : index
    %c0_40 = arith.constant 0 : index
    %76 = vector.load %arg3[%c6, %c0_39, %c0_40] : memref<15x8x128xf32, #tpu.memory_space<vmem>>, vector<1x8x128xf32>
    %77 = vector.shape_cast %76 : vector<1x8x128xf32> to vector<8x128xf32>
    %78 = vector.extract_strided_slice %77 {offsets = [0, 0], sizes = [1, 128], strides = [1, 1]} : vector<8x128xf32> to vector<1x128xf32>
    %79 = vector.broadcast %78 : vector<1x128xf32> to vector<64x128xf32>
    %80 = arith.addf %75, %79 : vector<64x128xf32>
    %cst_41 = arith.constant 0.000000e+00 : f32
    %81 = vector.broadcast %cst_41 : f32 to vector<64x128xf32>
    %82 = arith.maximumf %80, %81 : vector<64x128xf32>
    %83 = vector.extract_strided_slice %82 {offsets = [0, 0], sizes = [32, 128], strides = [1, 1]} : vector<64x128xf32> to vector<32x128xf32>
    %84 = vector.extract_strided_slice %82 {offsets = [32, 0], sizes = [32, 128], strides = [1, 1]} : vector<64x128xf32> to vector<32x128xf32>
    %85 = arith.maximumf %83, %84 : vector<32x128xf32>
    %86 = vector.extract_strided_slice %85 {offsets = [0, 0], sizes = [16, 128], strides = [1, 1]} : vector<32x128xf32> to vector<16x128xf32>
    %87 = vector.extract_strided_slice %85 {offsets = [16, 0], sizes = [16, 128], strides = [1, 1]} : vector<32x128xf32> to vector<16x128xf32>
    %88 = arith.maximumf %86, %87 : vector<16x128xf32>
    %89 = vector.extract_strided_slice %88 {offsets = [0, 0], sizes = [8, 128], strides = [1, 1]} : vector<16x128xf32> to vector<8x128xf32>
    %90 = vector.extract_strided_slice %88 {offsets = [8, 0], sizes = [8, 128], strides = [1, 1]} : vector<16x128xf32> to vector<8x128xf32>
    %91 = arith.maximumf %89, %90 : vector<8x128xf32>
    %92 = vector.extract_strided_slice %1 {offsets = [72, 0], sizes = [64, 16], strides = [1, 1]} : vector<168x128xf32> to vector<64x16xf32>
    %cst_42 = arith.constant 0.000000e+00 : f32
    %93 = vector.broadcast %cst_42 : f32 to vector<8x16xf32>
    %94 = vector.extract_strided_slice %92 {offsets = [0, 0], sizes = [56, 16], strides = [1, 1]} : vector<64x16xf32> to vector<56x16xf32>
    %95 = tpu.concatenate %93, %94 in 0 : vector<8x16xf32>, vector<56x16xf32> -> vector<64x16xf32>
    %96 = arith.truncf %95 : vector<64x16xf32> to vector<64x16xbf16>
    %c304 = arith.constant 304 : index
    %c0_43 = arith.constant 0 : index
    %97 = vector.load %arg2[%c304, %c0_43] : memref<1440x128xbf16, #tpu.memory_space<vmem>>, vector<16x128xbf16>
    %cst_44 = arith.constant dense<0.000000e+00> : vector<64x128xf32>
    %98 = tpu.matmul %96, %97, %cst_44 {dimension_numbers = #tpu.dot_dimension_numbers<[1], [0], [0], [1], [0, 0, 1, 1], [], []>} : vector<64x16xbf16>, vector<16x128xbf16>, vector<64x128xf32> -> vector<64x128xf32>
    %99 = arith.truncf %92 : vector<64x16xf32> to vector<64x16xbf16>
    %c320 = arith.constant 320 : index
    %c0_45 = arith.constant 0 : index
    %100 = vector.load %arg2[%c320, %c0_45] : memref<1440x128xbf16, #tpu.memory_space<vmem>>, vector<16x128xbf16>
    %cst_46 = arith.constant dense<0.000000e+00> : vector<64x128xf32>
    %101 = tpu.matmul %99, %100, %cst_46 {dimension_numbers = #tpu.dot_dimension_numbers<[1], [0], [0], [1], [0, 0, 1, 1], [], []>} : vector<64x16xbf16>, vector<16x128xbf16>, vector<64x128xf32> -> vector<64x128xf32>
    %102 = arith.addf %98, %101 : vector<64x128xf32>
    %cst_47 = arith.constant 0.000000e+00 : f32
    %103 = vector.broadcast %cst_47 : f32 to vector<8x16xf32>
    %104 = vector.extract_strided_slice %92 {offsets = [8, 0], sizes = [56, 16], strides = [1, 1]} : vector<64x16xf32> to vector<56x16xf32>
    %105 = tpu.concatenate %104, %103 in 0 : vector<56x16xf32>, vector<8x16xf32> -> vector<64x16xf32>
    %106 = arith.truncf %105 : vector<64x16xf32> to vector<64x16xbf16>
    %c336 = arith.constant 336 : index
    %c0_48 = arith.constant 0 : index
    %107 = vector.load %arg2[%c336, %c0_48] : memref<1440x128xbf16, #tpu.memory_space<vmem>>, vector<16x128xbf16>
    %cst_49 = arith.constant dense<0.000000e+00> : vector<64x128xf32>
    %108 = tpu.matmul %106, %107, %cst_49 {dimension_numbers = #tpu.dot_dimension_numbers<[1], [0], [0], [1], [0, 0, 1, 1], [], []>} : vector<64x16xbf16>, vector<16x128xbf16>, vector<64x128xf32> -> vector<64x128xf32>
    %109 = arith.addf %102, %108 : vector<64x128xf32>
    %c4 = arith.constant 4 : index
    %c0_50 = arith.constant 0 : index
    %c0_51 = arith.constant 0 : index
    %110 = vector.load %arg3[%c4, %c0_50, %c0_51] : memref<15x8x128xf32, #tpu.memory_space<vmem>>, vector<1x8x128xf32>
    %111 = vector.shape_cast %110 : vector<1x8x128xf32> to vector<8x128xf32>
    %112 = vector.extract_strided_slice %111 {offsets = [0, 0], sizes = [1, 128], strides = [1, 1]} : vector<8x128xf32> to vector<1x128xf32>
    %113 = vector.broadcast %112 : vector<1x128xf32> to vector<64x128xf32>
    %114 = arith.addf %109, %113 : vector<64x128xf32>
    %cst_52 = arith.constant 0.000000e+00 : f32
    %115 = vector.broadcast %cst_52 : f32 to vector<64x128xf32>
    %116 = arith.maximumf %114, %115 : vector<64x128xf32>
    %117 = vector.extract_strided_slice %116 {offsets = [0, 0], sizes = [64, 16], strides = [1, 1]} : vector<64x128xf32> to vector<64x16xf32>
    %cst_53 = arith.constant 0.000000e+00 : f32
    %118 = vector.broadcast %cst_53 : f32 to vector<8x16xf32>
    %119 = vector.extract_strided_slice %117 {offsets = [0, 0], sizes = [56, 16], strides = [1, 1]} : vector<64x16xf32> to vector<56x16xf32>
    %120 = tpu.concatenate %118, %119 in 0 : vector<8x16xf32>, vector<56x16xf32> -> vector<64x16xf32>
    %121 = arith.truncf %120 : vector<64x16xf32> to vector<64x16xbf16>
    %c448 = arith.constant 448 : index
    %c0_54 = arith.constant 0 : index
    %122 = vector.load %arg2[%c448, %c0_54] : memref<1440x128xbf16, #tpu.memory_space<vmem>>, vector<16x128xbf16>
    %cst_55 = arith.constant dense<0.000000e+00> : vector<64x128xf32>
    %123 = tpu.matmul %121, %122, %cst_55 {dimension_numbers = #tpu.dot_dimension_numbers<[1], [0], [0], [1], [0, 0, 1, 1], [], []>} : vector<64x16xbf16>, vector<16x128xbf16>, vector<64x128xf32> -> vector<64x128xf32>
    %124 = arith.truncf %117 : vector<64x16xf32> to vector<64x16xbf16>
    %c464 = arith.constant 464 : index
    %c0_56 = arith.constant 0 : index
    %125 = vector.load %arg2[%c464, %c0_56] : memref<1440x128xbf16, #tpu.memory_space<vmem>>, vector<16x128xbf16>
    %cst_57 = arith.constant dense<0.000000e+00> : vector<64x128xf32>
    %126 = tpu.matmul %124, %125, %cst_57 {dimension_numbers = #tpu.dot_dimension_numbers<[1], [0], [0], [1], [0, 0, 1, 1], [], []>} : vector<64x16xbf16>, vector<16x128xbf16>, vector<64x128xf32> -> vector<64x128xf32>
    %127 = arith.addf %123, %126 : vector<64x128xf32>
    %cst_58 = arith.constant 0.000000e+00 : f32
    %128 = vector.broadcast %cst_58 : f32 to vector<8x16xf32>
    %129 = vector.extract_strided_slice %117 {offsets = [8, 0], sizes = [56, 16], strides = [1, 1]} : vector<64x16xf32> to vector<56x16xf32>
    %130 = tpu.concatenate %129, %128 in 0 : vector<56x16xf32>, vector<8x16xf32> -> vector<64x16xf32>
    %131 = arith.truncf %130 : vector<64x16xf32> to vector<64x16xbf16>
    %c480 = arith.constant 480 : index
    %c0_59 = arith.constant 0 : index
    %132 = vector.load %arg2[%c480, %c0_59] : memref<1440x128xbf16, #tpu.memory_space<vmem>>, vector<16x128xbf16>
    %cst_60 = arith.constant dense<0.000000e+00> : vector<64x128xf32>
    %133 = tpu.matmul %131, %132, %cst_60 {dimension_numbers = #tpu.dot_dimension_numbers<[1], [0], [0], [1], [0, 0, 1, 1], [], []>} : vector<64x16xbf16>, vector<16x128xbf16>, vector<64x128xf32> -> vector<64x128xf32>
    %134 = arith.addf %127, %133 : vector<64x128xf32>
    %c7 = arith.constant 7 : index
    %c0_61 = arith.constant 0 : index
    %c0_62 = arith.constant 0 : index
    %135 = vector.load %arg3[%c7, %c0_61, %c0_62] : memref<15x8x128xf32, #tpu.memory_space<vmem>>, vector<1x8x128xf32>
    %136 = vector.shape_cast %135 : vector<1x8x128xf32> to vector<8x128xf32>
    %137 = vector.extract_strided_slice %136 {offsets = [0, 0], sizes = [1, 128], strides = [1, 1]} : vector<8x128xf32> to vector<1x128xf32>
    %138 = vector.broadcast %137 : vector<1x128xf32> to vector<64x128xf32>
    %139 = arith.addf %134, %138 : vector<64x128xf32>
    %cst_63 = arith.constant 0.000000e+00 : f32
    %140 = vector.broadcast %cst_63 : f32 to vector<64x128xf32>
    %141 = arith.maximumf %139, %140 : vector<64x128xf32>
    %142 = vector.extract_strided_slice %141 {offsets = [0, 0], sizes = [32, 128], strides = [1, 1]} : vector<64x128xf32> to vector<32x128xf32>
    %143 = vector.extract_strided_slice %141 {offsets = [32, 0], sizes = [32, 128], strides = [1, 1]} : vector<64x128xf32> to vector<32x128xf32>
    %144 = arith.maximumf %142, %143 : vector<32x128xf32>
    %145 = vector.extract_strided_slice %144 {offsets = [0, 0], sizes = [16, 128], strides = [1, 1]} : vector<32x128xf32> to vector<16x128xf32>
    %146 = vector.extract_strided_slice %144 {offsets = [16, 0], sizes = [16, 128], strides = [1, 1]} : vector<32x128xf32> to vector<16x128xf32>
    %147 = arith.maximumf %145, %146 : vector<16x128xf32>
    %148 = vector.extract_strided_slice %147 {offsets = [0, 0], sizes = [8, 128], strides = [1, 1]} : vector<16x128xf32> to vector<8x128xf32>
    %149 = vector.extract_strided_slice %147 {offsets = [8, 0], sizes = [8, 128], strides = [1, 1]} : vector<16x128xf32> to vector<8x128xf32>
    %150 = arith.maximumf %148, %149 : vector<8x128xf32>
    %151 = arith.addf %91, %150 : vector<8x128xf32>
    %152 = vector.extract_strided_slice %1 {offsets = [136, 0], sizes = [32, 16], strides = [1, 1]} : vector<168x128xf32> to vector<32x16xf32>
    %cst_64 = arith.constant 0.000000e+00 : f32
    %153 = vector.broadcast %cst_64 : f32 to vector<8x16xf32>
    %154 = vector.extract_strided_slice %152 {offsets = [0, 0], sizes = [24, 16], strides = [1, 1]} : vector<32x16xf32> to vector<24x16xf32>
    %155 = tpu.concatenate %153, %154 in 0 : vector<8x16xf32>, vector<24x16xf32> -> vector<32x16xf32>
    %156 = arith.truncf %155 : vector<32x16xf32> to vector<32x16xbf16>
    %c352 = arith.constant 352 : index
    %c0_65 = arith.constant 0 : index
    %157 = vector.load %arg2[%c352, %c0_65] : memref<1440x128xbf16, #tpu.memory_space<vmem>>, vector<16x128xbf16>
    %cst_66 = arith.constant dense<0.000000e+00> : vector<32x128xf32>
    %158 = tpu.matmul %156, %157, %cst_66 {dimension_numbers = #tpu.dot_dimension_numbers<[1], [0], [0], [1], [0, 0, 1, 1], [], []>} : vector<32x16xbf16>, vector<16x128xbf16>, vector<32x128xf32> -> vector<32x128xf32>
    %159 = arith.truncf %152 : vector<32x16xf32> to vector<32x16xbf16>
    %c368 = arith.constant 368 : index
    %c0_67 = arith.constant 0 : index
    %160 = vector.load %arg2[%c368, %c0_67] : memref<1440x128xbf16, #tpu.memory_space<vmem>>, vector<16x128xbf16>
    %cst_68 = arith.constant dense<0.000000e+00> : vector<32x128xf32>
    %161 = tpu.matmul %159, %160, %cst_68 {dimension_numbers = #tpu.dot_dimension_numbers<[1], [0], [0], [1], [0, 0, 1, 1], [], []>} : vector<32x16xbf16>, vector<16x128xbf16>, vector<32x128xf32> -> vector<32x128xf32>
    %162 = arith.addf %158, %161 : vector<32x128xf32>
    %cst_69 = arith.constant 0.000000e+00 : f32
    %163 = vector.broadcast %cst_69 : f32 to vector<8x16xf32>
    %164 = vector.extract_strided_slice %152 {offsets = [8, 0], sizes = [24, 16], strides = [1, 1]} : vector<32x16xf32> to vector<24x16xf32>
    %165 = tpu.concatenate %164, %163 in 0 : vector<24x16xf32>, vector<8x16xf32> -> vector<32x16xf32>
    %166 = arith.truncf %165 : vector<32x16xf32> to vector<32x16xbf16>
    %c384 = arith.constant 384 : index
    %c0_70 = arith.constant 0 : index
    %167 = vector.load %arg2[%c384, %c0_70] : memref<1440x128xbf16, #tpu.memory_space<vmem>>, vector<16x128xbf16>
    %cst_71 = arith.constant dense<0.000000e+00> : vector<32x128xf32>
    %168 = tpu.matmul %166, %167, %cst_71 {dimension_numbers = #tpu.dot_dimension_numbers<[1], [0], [0], [1], [0, 0, 1, 1], [], []>} : vector<32x16xbf16>, vector<16x128xbf16>, vector<32x128xf32> -> vector<32x128xf32>
    %169 = arith.addf %162, %168 : vector<32x128xf32>
    %c5 = arith.constant 5 : index
    %c0_72 = arith.constant 0 : index
    %c0_73 = arith.constant 0 : index
    %170 = vector.load %arg3[%c5, %c0_72, %c0_73] : memref<15x8x128xf32, #tpu.memory_space<vmem>>, vector<1x8x128xf32>
    %171 = vector.shape_cast %170 : vector<1x8x128xf32> to vector<8x128xf32>
    %172 = vector.extract_strided_slice %171 {offsets = [0, 0], sizes = [1, 128], strides = [1, 1]} : vector<8x128xf32> to vector<1x128xf32>
    %173 = vector.broadcast %172 : vector<1x128xf32> to vector<32x128xf32>
    %174 = arith.addf %169, %173 : vector<32x128xf32>
    %cst_74 = arith.constant 0.000000e+00 : f32
    %175 = vector.broadcast %cst_74 : f32 to vector<32x128xf32>
    %176 = arith.maximumf %174, %175 : vector<32x128xf32>
    %177 = vector.extract_strided_slice %176 {offsets = [0, 0], sizes = [32, 16], strides = [1, 1]} : vector<32x128xf32> to vector<32x16xf32>
    %cst_75 = arith.constant 0.000000e+00 : f32
    %178 = vector.broadcast %cst_75 : f32 to vector<8x16xf32>
    %179 = vector.extract_strided_slice %177 {offsets = [0, 0], sizes = [24, 16], strides = [1, 1]} : vector<32x16xf32> to vector<24x16xf32>
    %180 = tpu.concatenate %178, %179 in 0 : vector<8x16xf32>, vector<24x16xf32> -> vector<32x16xf32>
    %181 = arith.truncf %180 : vector<32x16xf32> to vector<32x16xbf16>
    %c496 = arith.constant 496 : index
    %c0_76 = arith.constant 0 : index
    %182 = vector.load %arg2[%c496, %c0_76] : memref<1440x128xbf16, #tpu.memory_space<vmem>>, vector<16x128xbf16>
    %cst_77 = arith.constant dense<0.000000e+00> : vector<32x128xf32>
    %183 = tpu.matmul %181, %182, %cst_77 {dimension_numbers = #tpu.dot_dimension_numbers<[1], [0], [0], [1], [0, 0, 1, 1], [], []>} : vector<32x16xbf16>, vector<16x128xbf16>, vector<32x128xf32> -> vector<32x128xf32>
    %184 = arith.truncf %177 : vector<32x16xf32> to vector<32x16xbf16>
    %c512 = arith.constant 512 : index
    %c0_78 = arith.constant 0 : index
    %185 = vector.load %arg2[%c512, %c0_78] : memref<1440x128xbf16, #tpu.memory_space<vmem>>, vector<16x128xbf16>
    %cst_79 = arith.constant dense<0.000000e+00> : vector<32x128xf32>
    %186 = tpu.matmul %184, %185, %cst_79 {dimension_numbers = #tpu.dot_dimension_numbers<[1], [0], [0], [1], [0, 0, 1, 1], [], []>} : vector<32x16xbf16>, vector<16x128xbf16>, vector<32x128xf32> -> vector<32x128xf32>
    %187 = arith.addf %183, %186 : vector<32x128xf32>
    %cst_80 = arith.constant 0.000000e+00 : f32
    %188 = vector.broadcast %cst_80 : f32 to vector<8x16xf32>
    %189 = vector.extract_strided_slice %177 {offsets = [8, 0], sizes = [24, 16], strides = [1, 1]} : vector<32x16xf32> to vector<24x16xf32>
    %190 = tpu.concatenate %189, %188 in 0 : vector<24x16xf32>, vector<8x16xf32> -> vector<32x16xf32>
    %191 = arith.truncf %190 : vector<32x16xf32> to vector<32x16xbf16>
    %c528 = arith.constant 528 : index
    %c0_81 = arith.constant 0 : index
    %192 = vector.load %arg2[%c528, %c0_81] : memref<1440x128xbf16, #tpu.memory_space<vmem>>, vector<16x128xbf16>
    %cst_82 = arith.constant dense<0.000000e+00> : vector<32x128xf32>
    %193 = tpu.matmul %191, %192, %cst_82 {dimension_numbers = #tpu.dot_dimension_numbers<[1], [0], [0], [1], [0, 0, 1, 1], [], []>} : vector<32x16xbf16>, vector<16x128xbf16>, vector<32x128xf32> -> vector<32x128xf32>
    %194 = arith.addf %187, %193 : vector<32x128xf32>
    %c8 = arith.constant 8 : index
    %c0_83 = arith.constant 0 : index
    %c0_84 = arith.constant 0 : index
    %195 = vector.load %arg3[%c8, %c0_83, %c0_84] : memref<15x8x128xf32, #tpu.memory_space<vmem>>, vector<1x8x128xf32>
    %196 = vector.shape_cast %195 : vector<1x8x128xf32> to vector<8x128xf32>
    %197 = vector.extract_strided_slice %196 {offsets = [0, 0], sizes = [1, 128], strides = [1, 1]} : vector<8x128xf32> to vector<1x128xf32>
    %198 = vector.broadcast %197 : vector<1x128xf32> to vector<32x128xf32>
    %199 = arith.addf %194, %198 : vector<32x128xf32>
    %cst_85 = arith.constant 0.000000e+00 : f32
    %200 = vector.broadcast %cst_85 : f32 to vector<32x128xf32>
    %201 = arith.maximumf %199, %200 : vector<32x128xf32>
    %202 = vector.extract_strided_slice %201 {offsets = [0, 0], sizes = [16, 128], strides = [1, 1]} : vector<32x128xf32> to vector<16x128xf32>
    %203 = vector.extract_strided_slice %201 {offsets = [16, 0], sizes = [16, 128], strides = [1, 1]} : vector<32x128xf32> to vector<16x128xf32>
    %204 = arith.maximumf %202, %203 : vector<16x128xf32>
    %205 = vector.extract_strided_slice %204 {offsets = [0, 0], sizes = [8, 128], strides = [1, 1]} : vector<16x128xf32> to vector<8x128xf32>
    %206 = vector.extract_strided_slice %204 {offsets = [8, 0], sizes = [8, 128], strides = [1, 1]} : vector<16x128xf32> to vector<8x128xf32>
    %207 = arith.maximumf %205, %206 : vector<8x128xf32>
    %208 = arith.addf %151, %207 : vector<8x128xf32>
    %209 = arith.truncf %32 : vector<8x128xf32> to vector<8x128xbf16>
    %c544 = arith.constant 544 : index
    %c0_86 = arith.constant 0 : index
    %210 = vector.load %arg2[%c544, %c0_86] : memref<1440x128xbf16, #tpu.memory_space<vmem>>, vector<128x128xbf16>
    %cst_87 = arith.constant dense<0.000000e+00> : vector<8x128xf32>
    %211 = tpu.matmul %209, %210, %cst_87 {dimension_numbers = #tpu.dot_dimension_numbers<[1], [0], [0], [1], [0, 0, 1, 1], [], []>} : vector<8x128xbf16>, vector<128x128xbf16>, vector<8x128xf32> -> vector<8x128xf32>
    %212 = arith.truncf %208 : vector<8x128xf32> to vector<8x128xbf16>
    %c672 = arith.constant 672 : index
    %c0_88 = arith.constant 0 : index
    %213 = vector.load %arg2[%c672, %c0_88] : memref<1440x128xbf16, #tpu.memory_space<vmem>>, vector<128x128xbf16>
    %cst_89 = arith.constant dense<0.000000e+00> : vector<8x128xf32>
    %214 = tpu.matmul %212, %213, %cst_89 {dimension_numbers = #tpu.dot_dimension_numbers<[1], [0], [0], [1], [0, 0, 1, 1], [], []>} : vector<8x128xbf16>, vector<128x128xbf16>, vector<8x128xf32> -> vector<8x128xf32>
    %215 = arith.addf %211, %214 : vector<8x128xf32>
    %c9 = arith.constant 9 : index
    %c0_90 = arith.constant 0 : index
    %c0_91 = arith.constant 0 : index
    %216 = vector.load %arg3[%c9, %c0_90, %c0_91] : memref<15x8x128xf32, #tpu.memory_space<vmem>>, vector<1x8x128xf32>
    %217 = vector.shape_cast %216 : vector<1x8x128xf32> to vector<8x128xf32>
    %218 = arith.addf %215, %217 : vector<8x128xf32>
    %cst_92 = arith.constant 0.000000e+00 : f32
    %219 = vector.broadcast %cst_92 : f32 to vector<8x128xf32>
    %220 = arith.maximumf %218, %219 : vector<8x128xf32>
    %221 = arith.truncf %220 : vector<8x128xf32> to vector<8x128xbf16>
    %c800 = arith.constant 800 : index
    %c0_93 = arith.constant 0 : index
    %222 = vector.load %arg2[%c800, %c0_93] : memref<1440x128xbf16, #tpu.memory_space<vmem>>, vector<128x128xbf16>
    %cst_94 = arith.constant dense<0.000000e+00> : vector<8x128xf32>
    %223 = tpu.matmul %221, %222, %cst_94 {dimension_numbers = #tpu.dot_dimension_numbers<[1], [0], [0], [1], [0, 0, 1, 1], [], []>} : vector<8x128xbf16>, vector<128x128xbf16>, vector<8x128xf32> -> vector<8x128xf32>
    %c10 = arith.constant 10 : index
    %c0_95 = arith.constant 0 : index
    %c0_96 = arith.constant 0 : index
    %224 = vector.load %arg3[%c10, %c0_95, %c0_96] : memref<15x8x128xf32, #tpu.memory_space<vmem>>, vector<1x8x128xf32>
    %225 = vector.shape_cast %224 : vector<1x8x128xf32> to vector<8x128xf32>
    %226 = arith.addf %223, %225 : vector<8x128xf32>
    %cst_97 = arith.constant 0.000000e+00 : f32
    %227 = vector.broadcast %cst_97 : f32 to vector<8x128xf32>
    %228 = arith.maximumf %226, %227 : vector<8x128xf32>
    %229 = arith.truncf %228 : vector<8x128xf32> to vector<8x128xbf16>
    %c928 = arith.constant 928 : index
    %c0_98 = arith.constant 0 : index
    %230 = vector.load %arg2[%c928, %c0_98] : memref<1440x128xbf16, #tpu.memory_space<vmem>>, vector<128x128xbf16>
    %cst_99 = arith.constant dense<0.000000e+00> : vector<8x128xf32>
    %231 = tpu.matmul %229, %230, %cst_99 {dimension_numbers = #tpu.dot_dimension_numbers<[1], [0], [0], [1], [0, 0, 1, 1], [], []>} : vector<8x128xbf16>, vector<128x128xbf16>, vector<8x128xf32> -> vector<8x128xf32>
    %c11 = arith.constant 11 : index
    %c0_100 = arith.constant 0 : index
    %c0_101 = arith.constant 0 : index
    %232 = vector.load %arg3[%c11, %c0_100, %c0_101] : memref<15x8x128xf32, #tpu.memory_space<vmem>>, vector<1x8x128xf32>
    %233 = vector.shape_cast %232 : vector<1x8x128xf32> to vector<8x128xf32>
    %234 = arith.addf %231, %233 : vector<8x128xf32>
    %cst_102 = arith.constant 0.000000e+00 : f32
    %235 = vector.broadcast %cst_102 : f32 to vector<8x128xf32>
    %236 = arith.maximumf %234, %235 : vector<8x128xf32>
    %237 = arith.truncf %236 : vector<8x128xf32> to vector<8x128xbf16>
    %c1056 = arith.constant 1056 : index
    %c0_103 = arith.constant 0 : index
    %238 = vector.load %arg2[%c1056, %c0_103] : memref<1440x128xbf16, #tpu.memory_space<vmem>>, vector<128x128xbf16>
    %cst_104 = arith.constant dense<0.000000e+00> : vector<8x128xf32>
    %239 = tpu.matmul %237, %238, %cst_104 {dimension_numbers = #tpu.dot_dimension_numbers<[1], [0], [0], [1], [0, 0, 1, 1], [], []>} : vector<8x128xbf16>, vector<128x128xbf16>, vector<8x128xf32> -> vector<8x128xf32>
    %c12 = arith.constant 12 : index
    %c0_105 = arith.constant 0 : index
    %c0_106 = arith.constant 0 : index
    %240 = vector.load %arg3[%c12, %c0_105, %c0_106] : memref<15x8x128xf32, #tpu.memory_space<vmem>>, vector<1x8x128xf32>
    %241 = vector.shape_cast %240 : vector<1x8x128xf32> to vector<8x128xf32>
    %242 = arith.addf %239, %241 : vector<8x128xf32>
    %cst_107 = arith.constant 0.000000e+00 : f32
    %243 = vector.broadcast %cst_107 : f32 to vector<8x128xf32>
    %244 = arith.maximumf %242, %243 : vector<8x128xf32>
    %245 = arith.truncf %244 : vector<8x128xf32> to vector<8x128xbf16>
    %c1184 = arith.constant 1184 : index
    %c0_108 = arith.constant 0 : index
    %246 = vector.load %arg2[%c1184, %c0_108] : memref<1440x128xbf16, #tpu.memory_space<vmem>>, vector<128x128xbf16>
    %cst_109 = arith.constant dense<0.000000e+00> : vector<8x128xf32>
    %247 = tpu.matmul %245, %246, %cst_109 {dimension_numbers = #tpu.dot_dimension_numbers<[1], [0], [0], [1], [0, 0, 1, 1], [], []>} : vector<8x128xbf16>, vector<128x128xbf16>, vector<8x128xf32> -> vector<8x128xf32>
    %c13 = arith.constant 13 : index
    %c0_110 = arith.constant 0 : index
    %c0_111 = arith.constant 0 : index
    %248 = vector.load %arg3[%c13, %c0_110, %c0_111] : memref<15x8x128xf32, #tpu.memory_space<vmem>>, vector<1x8x128xf32>
    %249 = vector.shape_cast %248 : vector<1x8x128xf32> to vector<8x128xf32>
    %250 = arith.addf %247, %249 : vector<8x128xf32>
    %cst_112 = arith.constant 0.000000e+00 : f32
    %251 = vector.broadcast %cst_112 : f32 to vector<8x128xf32>
    %252 = arith.maximumf %250, %251 : vector<8x128xf32>
    %253 = arith.truncf %252 : vector<8x128xf32> to vector<8x128xbf16>
    %c1312 = arith.constant 1312 : index
    %c0_113 = arith.constant 0 : index
    %254 = vector.load %arg2[%c1312, %c0_113] : memref<1440x128xbf16, #tpu.memory_space<vmem>>, vector<128x128xbf16>
    %cst_114 = arith.constant dense<0.000000e+00> : vector<8x128xf32>
    %255 = tpu.matmul %253, %254, %cst_114 {dimension_numbers = #tpu.dot_dimension_numbers<[1], [0], [0], [1], [0, 0, 1, 1], [], []>} : vector<8x128xbf16>, vector<128x128xbf16>, vector<8x128xf32> -> vector<8x128xf32>
    %c14 = arith.constant 14 : index
    %c0_115 = arith.constant 0 : index
    %c0_116 = arith.constant 0 : index
    %256 = vector.load %arg3[%c14, %c0_115, %c0_116] : memref<15x8x128xf32, #tpu.memory_space<vmem>>, vector<1x8x128xf32>
    %257 = vector.shape_cast %256 : vector<1x8x128xf32> to vector<8x128xf32>
    %258 = arith.addf %255, %257 : vector<8x128xf32>
    %259 = vector.extract_strided_slice %258 {offsets = [0, 0], sizes = [8, 2], strides = [1, 1]} : vector<8x128xf32> to vector<8x2xf32>
    %cst_117 = arith.constant dense<0xFF800000> : vector<8xf32>
    %260 = vector.multi_reduction <maximumf>, %259, %cst_117 [1] : vector<8x2xf32> to vector<8xf32>
    %261 = vector.shape_cast %260 : vector<8xf32> to vector<8x1xf32>
    %262 = vector.broadcast %261 : vector<8x1xf32> to vector<8x2xf32>
    %263 = arith.subf %259, %262 : vector<8x2xf32>
    %264 = math.exp %263 : vector<8x2xf32>
    %cst_118 = arith.constant dense<0.000000e+00> : vector<8xf32>
    %265 = vector.multi_reduction <add>, %264, %cst_118 [1] : vector<8x2xf32> to vector<8xf32>
    %266 = vector.shape_cast %265 : vector<8xf32> to vector<8x1xf32>
    %267 = math.log %266 : vector<8x1xf32>
    %268 = vector.broadcast %267 : vector<8x1xf32> to vector<8x2xf32>
    %269 = arith.subf %263, %268 : vector<8x2xf32>
    %270 = vector.extract_strided_slice %258 {offsets = [0, 2], sizes = [8, 4], strides = [1, 1]} : vector<8x128xf32> to vector<8x4xf32>
    %cst_119 = arith.constant dense<0xFF800000> : vector<8xf32>
    %271 = vector.multi_reduction <maximumf>, %270, %cst_119 [1] : vector<8x4xf32> to vector<8xf32>
    %272 = vector.shape_cast %271 : vector<8xf32> to vector<8x1xf32>
    %273 = vector.broadcast %272 : vector<8x1xf32> to vector<8x4xf32>
    %274 = arith.subf %270, %273 : vector<8x4xf32>
    %275 = math.exp %274 : vector<8x4xf32>
    %cst_120 = arith.constant dense<0.000000e+00> : vector<8xf32>
    %276 = vector.multi_reduction <add>, %275, %cst_120 [1] : vector<8x4xf32> to vector<8xf32>
    %277 = vector.shape_cast %276 : vector<8xf32> to vector<8x1xf32>
    %278 = tpu.reciprocal %277 : vector<8x1xf32> -> vector<8x1xf32>
    %279 = vector.broadcast %278 : vector<8x1xf32> to vector<8x4xf32>
    %280 = arith.mulf %275, %279 : vector<8x4xf32>
    %cst_121 = arith.constant 0.000000e+00 : f32
    %281 = vector.broadcast %cst_121 : f32 to vector<8x122xf32>
    %282 = tpu.concatenate %269, %280, %281 in 1 : vector<8x2xf32>, vector<8x4xf32>, vector<8x122xf32> -> vector<8x128xf32>
    %c0_122 = arith.constant 0 : index
    %c0_123 = arith.constant 0 : index
    %283 = vector.load %arg4[%c0_122, %c0_123] : memref<8x128xf32, #tpu.memory_space<vmem>>, vector<8x128xf32>
    tpu.vector_store %arg4[%c0_122, %c0_123], %282 {strides = array<i32>} : memref<8x128xf32, #tpu.memory_space<vmem>>, vector<8x128xf32>,
    return
  }
  func.func @transform_0(%arg0: i32) -> (i32, i32, i32) {
    %c0_i32 = arith.constant 0 : i32
    %c0_i32_0 = arith.constant 0 : i32
    %c0_i32_1 = arith.constant 0 : i32
    return %c0_i32, %arg0, %c0_i32_0 : i32, i32, i32
  }
  func.func @transform_1(%arg0: i32) -> (i32, i32) {
    %c0_i32 = arith.constant 0 : i32
    %c0_i32_0 = arith.constant 0 : i32
    %c0_i32_1 = arith.constant 0 : i32
    return %c0_i32, %c0_i32_0 : i32, i32
  }
  func.func @transform_2(%arg0: i32) -> (i32, i32, i32) {
    %c0_i32 = arith.constant 0 : i32
    %c0_i32_0 = arith.constant 0 : i32
    %c0_i32_1 = arith.constant 0 : i32
    %c0_i32_2 = arith.constant 0 : i32
    return %c0_i32, %c0_i32_0, %c0_i32_1 : i32, i32, i32
  }
  func.func @transform_3(%arg0: i32) -> (i32, i32) {
    %c0_i32 = arith.constant 0 : i32
    %c0_i32_0 = arith.constant 0 : i32
    return %arg0, %c0_i32 : i32, i32
  }
}

</mosaic_0001>

<bundles_post_ra>
// kernel: auction_env_net_pallas.1
= control target key start
LH: loop header
LB: loop body
LE: loop exit
PB: predicated region body
PF: predicated region fallthrough
CT: control target
= control target key end

     0   :  { %8 = vsyncpa [#allocation3], 0  ;;  %s3608_s12 = smov [#allocation2]   ;;  %s3939_s0 = inlined_call_operand.vmem [shape: f32[21,8,128], index: 0, kind: input, shape index: {}]   ;;  %s3940_s1 = inlined_call_operand.hbm [shape: bf16[1440,128], index: 1, kind: input, shape index: {}]   ;;  %s3941_s2 = inlined_call_operand.vmem [shape: f32[15,8,128], index: 2, kind: input, shape index: {}]   ;;  %s3942_s3 = inlined_call_operand.vmem [shape: f32[8,128], index: 3, kind: output, shape index: {}]  }
   0x1   :  { %s16_s13 = sshll.u32 %s3608_s12, 4  ;;  %s3584_s16 = scalar_lea.hbm %s3940_s1, 11520  ;;  %s17_s13 = int_to_ptr.vmem [resolvable:$true] %s16_s13 }
   0x2   :  { %p3585_p0 = scmp.ne.s32.totalorder %s3940_s1, %s3584_s16  ;;  %p3588_p1 = scmp.lt.u32.totalorder %s3584_s16, %s3940_s1 }
   0x4   :  { %p3590_p2 = pnand %p3588_p1, %p3585_p0 }
   0x6   :  { %3593 = shalt.err (!%p3590_p2)
}
   0x7   :  { %s3594_s21 = scalar_lea.vmem %s17_s13, 11520  ;;  %p3599_p4 = scmp.lt.s32.totalorder %s17_s13, %s17_s13 }
   0x8   :  { %p3595_p3 = scmp.ne.s32.totalorder %s17_s13, %s3594_s21  ;;  %p3600_p5 = scmp.lt.s32.totalorder %s3594_s21, %s3594_s21 }
   0xa   :  { %p3601_p6 = por %p3600_p5, %p3599_p4 }
   0xc   :  { %p3602_p7 = pnand %p3601_p6, %p3595_p3 }
   0xe   :  { %3605 = shalt.err (!%p3602_p7)
}
   0xf   :  { %s3609_s22 = smov 64   ;;  %s3610_s23 = smov 4  }
  0x10   :  { %22 = dma.hbm_to_vmem [thread:$0]  %s3940_s1, 11520, %s17_s13, [#allocation3], %s3609_s22, %s3609_s22, %s3610_s23  }
  0x11   :  { %3606 = dma.done.wait [#allocation3], 11520  }
  0x12   :  { %3607 = vsyncadd [#allocation3], 4294955776  ;;  %v3611_v0 = vmov 0.0   ;;  %vm3612_vm0 = vmmov 0   ;;  %v3486_v1 = vld [vmem:[#allocation2] sm:$0xff]   ;;  %v3487_v2 = vld [vmem:[#allocation2 + $0x8] sm:$0xff]  }
  0x13   :  { %3056 = vmatprep.subr.bf16.mxu0 %v3611_v0  ;;  %3060 = vmatprep.mubr.msk.bf16.mxu0 %vm3612_vm0, %v3611_v0  ;;  %v29_v3 = vld [vmem:[%s3939_s0] sm:$0xff]  ;;  %vm68_vm1 = vcmask 261120   ;;  %v3488_v5 = vld [vmem:[#allocation2 + $0x10] sm:$0xff]   ;;  %v3494_v7 = vld [vmem:[#allocation2 + $0x28] sm:$0xff]   ;;  %vm310_vm2 = vcmask 523264   ;;  %vm376_vm3 = vcmask 130048  }
  0x14   :  { %3092 = vmatprep.subr.bf16.mxu1 %v3611_v0  ;;  %3100 = vmatprep.mubr.msk.bf16.mxu1 %vm3612_vm0, %v3611_v0  ;;  %v50_v4 = vpack.c.bf16 %v29_v3, %v29_v3  ;;  %v3492_v6 = vld [vmem:[#allocation2 + $0x20] sm:$0xff]   ;;  %v3489_v8 = vld [vmem:[#allocation2 + $0x18] sm:$0xff]   ;;  %v3496_v9 = vld [vmem:[#allocation2 + $0x30] sm:$0xff]   ;;  %vm2702_vm4 = vcmask 48144   ;;  %vm2689_vm5 = vcmask 15360   ;;  %s3613_s13 = smov 126  }
  0x15   :  { %3057 = vmatpush3.bf16.msra.mxu0 %v3486_v1  ;;  %3093 = vmatpush3.bf16.msra.mxu1 %v3492_v6  ;;  %v3490_v10 = vld [vmem:[#allocation2 + $0x40] sm:$0xff]   ;;  %v3491_v11 = vld [vmem:[#allocation2 + $0x48] sm:$0xff]   ;;  %v3493_v12 = vld [vmem:[#allocation2 + $0x50] sm:$0xff]   ;;  %vm2713_vm6 = vcmask 31744   ;;  %vm2720_vm7 = vcmask 48128  }
  0x16   :  { %3058 = vmatprep.subr.bf16.mxu0 %v3611_v0  ;;  %3094 = vmatprep.subr.bf16.mxu1 %v3611_v0  ;;  %v3495_v13 = vld [vmem:[#allocation2 + $0x58] sm:$0xff]   ;;  %v3497_v14 = vld [vmem:[#allocation2 + $0x60] sm:$0xff]   ;;  %v3499_v16 = vld [vmem:[#allocation2 + $0x68] sm:$0xff]  }
  0x17   :  { %v3498_v15 = vld [vmem:[#allocation2 + $0x38] sm:$0xff]   ;;  %v3500_v17 = vld [vmem:[#allocation2 + $0x88] sm:$0xff]   ;;  %v3501_v18 = vld [vmem:[#allocation2 + $0x70] sm:$0xff]  }
  0x18   :  { %v3502_v19 = vld [vmem:[#allocation2 + $0x78] sm:$0xff]   ;;  %v55_v20 = vld [vmem:[%s3941_s2] sm:$0xff]  ;;  %v30_v24 = vld [vmem:[%s3939_s0 + $0x8] sm:$0xff] }
  0x19   :  { %3059 = vmatpush3.bf16.msra.mxu0 %v3487_v2  ;;  %3095 = vmatpush3.bf16.msra.mxu1 %v3494_v7  ;;  %v31_v25 = vld [vmem:[%s3939_s0 + $0x10] sm:$0xff]  ;;  %v3503_v31 = vld [vmem:[#allocation2 + $0x80] sm:$0xff]   ;;  %v2731_v32 = vld [vmem:[%s3941_s2 + $0x8] sm:$0xff]  ;;  %v358_v50 = vpack.c.bf16 %v30_v24, %v3611_v0 }
  0x1a   :  { %3064 = vmatprep.subr.bf16.mxu0 %v3611_v0  ;;  %3096 = vmatprep.subr.bf16.mxu1 %v3611_v0  ;;  %v364_v29 = vpack.c.bf16 %v31_v25, %v30_v24  ;;  %v32_v34 = vld [vmem:[%s3939_s0 + $0x18] sm:$0xff]  ;;  %v33_v35 = vld [vmem:[%s3939_s0 + $0x20] sm:$0xff]  ;;  %v34_v37 = vld [vmem:[%s3939_s0 + $0x28] sm:$0xff] }
  0x1b   :  { %v35_v38 = vld [vmem:[%s3939_s0 + $0x30] sm:$0xff]  ;;  %v365_v42 = vpack.c.bf16 %v33_v35, %v32_v34  ;;  %v36_v47 = vld [vmem:[%s3939_s0 + $0x38] sm:$0xff]  ;;  %v37_v48 = vld [vmem:[%s3939_s0 + $0x40] sm:$0xff]  ;;  %v359_v51 = vpack.c.bf16 %v32_v34, %v31_v25  ;;  %v360_v52 = vpack.c.bf16 %v34_v37, %v33_v35  ;;  %v624_v35 = vlaneseq }
  0x1c   :  { %3061 = vmatmul.mubr.msk.bf16.vlgmr.msra.gmra.mrb[0].mxu0 %vm68_vm1, %v50_v4  ;;  %v366_v44 = vpack.c.bf16 %v35_v38, %v34_v37  ;;  %v3504_v46 = vld [vmem:[#allocation2 + $0x90] sm:$0xff]   ;;  %v367_v49 = vpack.c.bf16 %v37_v48, %v36_v47  ;;  %v3505_v53 = vld [vmem:[#allocation2 + $0xa0] sm:$0xff]   ;;  %v361_v54 = vpack.c.bf16 %v36_v47, %v35_v38  ;;  %v3506_v55 = vld [vmem:[#allocation2 + $0x98] sm:$0xff]   ;;  %v537_v58 = vpack.c.bf16 %v3611_v0, %v37_v48 }
  0x1d   :  { %3065 = vmatpush3.bf16.msra.mxu0 %v3488_v5  ;;  %3068 = vmatprep.mubr.msk.bf16.mxu0 %vm3612_vm0, %v3611_v0  ;;  %v38_v56 = vld [vmem:[%s3939_s0 + $0x48] sm:$0xff]  ;;  %v39_v57 = vld [vmem:[%s3939_s0 + $0x50] sm:$0xff]  ;;  %v40_v60 = vld [vmem:[%s3939_s0 + $0x58] sm:$0xff] }
  0x1e   :  { %3066 = vmatprep.subr.bf16.mxu0 %v3611_v0  ;;  %3097 = vmatpush3.bf16.msra.mxu1 %v3496_v9  ;;  %v942_v59 = vpack.c.bf16 %v39_v57, %v38_v56  ;;  %v41_v61 = vld [vmem:[%s3939_s0 + $0x60] sm:$0xff]  ;;  %v42_v62 = vld [vmem:[%s3939_s0 + $0x68] sm:$0xff]  ;;  %v43_v63 = vld [vmem:[%s3939_s0 + $0x70] sm:$0xff]  ;;  %v936_v7 = vpack.c.bf16 %v38_v56, %v3611_v0 }
  0x1f   :  { %3098 = vmatprep.subr.bf16.mxu1 %v3611_v0  ;;  %v943_v1 = vpack.c.bf16 %v41_v61, %v40_v60  ;;  %v944_v2 = vpack.c.bf16 %v43_v63, %v42_v62  ;;  %v3507_v3 = vld [vmem:[#allocation2 + $0xa8] sm:$0xff]   ;;  %v45_v5 = vld [vmem:[%s3939_s0 + $0x80] sm:$0xff]  ;;  %v938_v9 = vpack.c.bf16 %v42_v62, %v41_v61  ;;  %v3511_v24 = vld [vmem:[#allocation2 + $0xd0] sm:$0xff]  }
  0x20   :  { %v3512_v25 = vld [vmem:[#allocation2 + $0xc8] sm:$0xff]   ;;  %v2764_v38 = vld [vmem:[%s3941_s2 + $0x18] sm:$0xff] }
  0x21   :  { %3067 = vmatpush3.bf16.msra.mxu0 %v3489_v8  ;;  %v937_v8 = vpack.c.bf16 %v40_v60, %v39_v57 }
  0x22   :  { %3072 = vmatprep.subr.bf16.mxu0 %v3611_v0  ;;  %3099 = vmatpush3.bf16.msra.mxu1 %v3498_v15  ;;  %v1114_v15 = vpack.c.bf16 %v3611_v0, %v45_v5 }
  0x23   :  { %3104 = vmatprep.subr.bf16.mxu1 %v3500_v17 }
  0x24   :  { %3069 = vmatmul.mubr.msk.bf16.vlgmr.msra.gmra.mrb[4].mxu0 %vm68_vm1, %v50_v4  ;;  %v44_v4 = vld [vmem:[%s3939_s0 + $0x78] sm:$0xff] }
  0x25   :  { %3073 = vmatpush3.bf16.msra.mxu0 %v3490_v10  ;;  %3088 = vmatprep.mubr.msk.bf16.mxu0 %vm3612_vm0, %v3611_v0  ;;  %v945_v6 = vpack.c.bf16 %v45_v5, %v44_v4  ;;  %v3508_v10 = vld [vmem:[#allocation2 + $0xb8] sm:$0xff]  }
  0x26   :  { %3074 = vmatprep.subr.bf16.mxu0 %v3611_v0 }
  0x29   :  { %3075 = vmatpush3.bf16.msra.mxu0 %v3491_v11  ;;  %v939_v11 = vpack.c.bf16 %v44_v4, %v43_v63 }
  0x2a   :  { %3076 = vmatprep.subr.bf16.mxu0 %v3611_v0 }
  0x2d   :  { %3077 = vmatpush3.bf16.msra.mxu0 %v3493_v12  ;;  %v3509_v12 = vld [vmem:[#allocation2 + $0xb0] sm:$0xff]  }
  0x2e   :  { %3078 = vmatprep.subr.bf16.mxu0 %v3611_v0 }
  0x31   :  { %3079 = vmatpush3.bf16.msra.mxu0 %v3495_v13  ;;  %v46_v13 = vld [vmem:[%s3939_s0 + $0x88] sm:$0xff] }
  0x32   :  { %3080 = vmatprep.subr.bf16.mxu0 %v3611_v0 }
  0x35   :  { %3081 = vmatpush3.bf16.msra.mxu0 %v3497_v14  ;;  %v47_v14 = vld [vmem:[%s3939_s0 + $0x90] sm:$0xff] }
  0x36   :  { %3082 = vmatprep.subr.bf16.mxu0 %v3611_v0 }
  0x39   :  { %3083 = vmatpush3.bf16.msra.mxu0 %v3499_v16  ;;  %v1518_v16 = vpack.c.bf16 %v47_v14, %v46_v13 }
  0x3a   :  { %3084 = vmatprep.subr.bf16.mxu0 %v3611_v0 }
  0x3d   :  { %3085 = vmatpush3.bf16.msra.mxu0 %v3501_v18  ;;  %v49_v18 = vld [vmem:[%s3939_s0 + $0xa0] sm:$0xff] }
  0x3e   :  { %3086 = vmatprep.subr.bf16.mxu0 %v3611_v0 }
  0x41   :  { %3087 = vmatpush3.bf16.msra.mxu0 %v3502_v19 }
  0x42   :  { %3134 = vmatprep.subr.bf16.mxu0 %v3511_v24 }
  0xef   :  { %v106_v21 = vpop.f32.mrb[0].mxu0 }
  0xf0   :  { %v107_v22 = vadd.f32 %v106_v21, %v55_v20  ;;  %v3062_v23 = vpop.f32.mrb[1].mxu0  ;;  %v1514_v20 = vpack.c.bf16 %v46_v13, %v3611_v0  ;;  %v3510_v21 = vld [vmem:[#allocation2 + $0xc0] sm:$0xff]  }
  0xf1   :  { %v109_v26 = vpop.f32.mrb[2].mxu0  ;;  %v1644_v23 = vpack.c.bf16 %v3611_v0, %v49_v18 }
  0xf2   :  { %v112_v27 = vmax.f32 %v107_v22, 0.0  ;;  %v3063_v28 = vpop.f32.mrb[3].mxu0 }
  0xf4   :  { %v172_v30 = vpack.c.bf16 %v112_v27, %v112_v27 }
  0xf6   :  { %3101 = vmatmul.mubr.msk.bf16.vlgmr.msra.gmra.mrb[0].mxu1 %vm310_vm2, %v172_v30 }
  0xf7   :  { %3105 = vmatpush3.bf16.msra.mxu1 %v3500_v17  ;;  %v165_v33 = vpop.f32.mrb[4].mxu0  ;;  %3106 = vmatprep.mubr.msk.bf16.mxu1 %vm376_vm3, %v364_v29  ;;  %v48_v17 = vld [vmem:[%s3939_s0 + $0x98] sm:$0xff] }
  0xf8   :  { %v166_v36 = vadd.f32 %v2731_v32, %v165_v33  ;;  %3114 = vmatprep.subr.bf16.mxu1 %v3503_v31  ;;  %v3070_v39 = vpop.f32.mrb[5].mxu0  ;;  %v1519_v19 = vpack.c.bf16 %v49_v18, %v48_v17  ;;  %v1515_v22 = vpack.c.bf16 %v48_v17, %v47_v14 }
  0xf9   :  { %v168_v40 = vpop.f32.mrb[6].mxu0 }
  0xfa   :  { %v171_v41 = vmax.f32 %v166_v36, 0.0  ;;  %v3071_v43 = vpop.f32.mrb[7].mxu0  ;;  %v625_v36 = vshrl.u32 %v624_v35, 7 }
  0xfc   :  { %v181_v45 = vpack.c.bf16 %v171_v41, %v171_v41  ;;  %v3782_v37 = vsub.s32 0, %v625_v36 }
  0xfe   :  { %3089 = vmatmul.mubr.bf16.vlgmr.msra.gmra.mrb[8].mxu0 %v181_v45  ;;  %3107 = vmatmul.mubr.msk.bf16.vlgmr.msra.gmra.mrb[4].mxu1 %vm376_vm3, %v365_v42  ;;  %v627_v39 = vrot.slane %v2764_v38, %v3782_v37 }
  0xff   :  { %3115 = vmatpush3.bf16.msra.mxu1 %v3503_v31  ;;  %3110 = vmatprep.mubr.msk.bf16.mxu1 %vm376_vm3, %v366_v44 }
 0x100   :  { %3124 = vmatprep.subr.bf16.mxu1 %v3504_v46  ;;  %3135 = vmatpush3.bf16.msra.mxu0 %v3511_v24 }
 0x101   :  { %3144 = vmatprep.subr.bf16.mxu0 %v3512_v25 }
 0x106   :  { %3111 = vmatmul.mubr.msk.bf16.gmra.mrb[8].mxu1 %vm376_vm3, %v367_v49 }
 0x107   :  { %3116 = vmatprep.mubr.msk.bf16.mxu1 %vm376_vm3, %v358_v50 }
 0x10e   :  { %3117 = vmatmul.mubr.msk.bf16.vlgmr.msra.gmra.mrb[4].mxu1 %vm376_vm3, %v359_v51 }
 0x10f   :  { %3125 = vmatpush3.bf16.msra.mxu1 %v3504_v46  ;;  %3120 = vmatprep.mubr.msk.bf16.mxu1 %vm376_vm3, %v360_v52 }
 0x110   :  { %3164 = vmatprep.subr.bf16.mxu1 %v3505_v53 }
 0x116   :  { %3121 = vmatmul.mubr.msk.bf16.gmra.mrb[8].mxu1 %vm376_vm3, %v361_v54 }
 0x117   :  { %3126 = vmatprep.mubr.msk.bf16.mxu1 %vm376_vm3, %v359_v51 }
 0x11e   :  { %3127 = vmatmul.mubr.msk.bf16.vlgmr.msra.gmra.mrb[4].mxu1 %vm376_vm3, %v360_v52 }
 0x11f   :  { %3165 = vmatpush3.bf16.msra.mxu1 %v3505_v53  ;;  %3130 = vmatprep.mubr.msk.bf16.mxu1 %vm376_vm3, %v361_v54 }
 0x120   :  { %3174 = vmatprep.subr.bf16.mxu1 %v3506_v55 }
 0x126   :  { %3131 = vmatmul.mubr.msk.bf16.gmra.mrb[8].mxu1 %vm376_vm3, %v537_v58  ;;  %v3513_v58 = vld [vmem:[#allocation2 + $0xd8] sm:$0xff]  }
 0x127   :  { %3166 = vmatprep.mubr.msk.bf16.mxu1 %vm376_vm3, %v942_v59 }
 0x12e   :  { %3167 = vmatmul.mubr.msk.bf16.vlgmr.msra.gmra.mrb[12].mxu1 %vm376_vm3, %v943_v1 }
 0x12f   :  { %3175 = vmatpush3.bf16.msra.mxu1 %v3506_v55  ;;  %3170 = vmatprep.mubr.msk.bf16.mxu1 %vm376_vm3, %v944_v2 }
 0x130   :  { %3184 = vmatprep.subr.bf16.mxu1 %v3507_v3 }
 0x136   :  { %3171 = vmatmul.mubr.msk.bf16.gmra.mrb[16].mxu1 %vm376_vm3, %v945_v6 }
 0x137   :  { %3176 = vmatprep.mubr.msk.bf16.mxu1 %vm376_vm3, %v936_v7 }
 0x13e   :  { %3177 = vmatmul.mubr.msk.bf16.vlgmr.msra.gmra.mrb[12].mxu1 %vm376_vm3, %v937_v8 }
 0x13f   :  { %3185 = vmatpush3.bf16.msra.mxu1 %v3507_v3  ;;  %3180 = vmatprep.mubr.msk.bf16.mxu1 %vm376_vm3, %v938_v9 }
 0x140   :  { %3224 = vmatprep.subr.bf16.mxu1 %v3508_v10 }
 0x146   :  { %3181 = vmatmul.mubr.msk.bf16.gmra.mrb[16].mxu1 %vm376_vm3, %v939_v11 }
 0x147   :  { %3186 = vmatprep.mubr.msk.bf16.mxu1 %vm376_vm3, %v937_v8 }
 0x14e   :  { %3187 = vmatmul.mubr.msk.bf16.vlgmr.msra.gmra.mrb[12].mxu1 %vm376_vm3, %v938_v9 }
 0x14f   :  { %3190 = vmatprep.mubr.msk.bf16.mxu1 %vm376_vm3, %v939_v11  ;;  %3225 = vmatpush3.bf16.msra.mxu1 %v3508_v10  ;;  %v3514_v10 = vld [vmem:[#allocation2 + $0xe8] sm:$0xff]   ;;  %v3515_v11 = vld [vmem:[#allocation2 + $0xe0] sm:$0xff]  }
 0x150   :  { %3230 = vmatprep.subr.bf16.mxu1 %v3509_v12 }
 0x156   :  { %3191 = vmatmul.mubr.msk.bf16.gmra.mrb[16].mxu1 %vm376_vm3, %v1114_v15 }
 0x157   :  { %3226 = vmatprep.mubr.msk.bf16.mxu1 %vm376_vm3, %v1518_v16 }
 0x15e   :  { %3227 = vmatmul.mubr.msk.bf16.vlgmr.msra.gmra.mrb[20].mxu1 %vm376_vm3, %v1519_v19 }
 0x15f   :  { %3231 = vmatpush3.bf16.msra.mxu1 %v3509_v12  ;;  %3232 = vmatprep.mubr.msk.bf16.mxu1 %vm376_vm3, %v1514_v20  ;;  %v2796_v12 = vld [vmem:[%s3941_s2 + $0x20] sm:$0xff] }
 0x160   :  { %3236 = vmatprep.subr.bf16.mxu1 %v3510_v21  ;;  %v1204_v13 = vrot.slane %v2796_v12, %v3782_v37  ;;  %v3522_v12 = vld [vmem:[#allocation2 + $0x120] sm:$0xff]  }
 0x16a   :  { %3233 = vmatmul.mubr.msk.bf16.vlgmr.msra.gmra.mrb[20].mxu1 %vm376_vm3, %v1515_v22 }
 0x16b   :  { %3237 = vmatpush3.bf16.msra.mxu1 %v3510_v21  ;;  %3238 = vmatprep.mubr.msk.bf16.mxu1 %vm376_vm3, %v1515_v22 }
 0x16c   :  { %3260 = vmatprep.subr.bf16.mxu1 %v3611_v0 }
 0x176   :  { %3239 = vmatmul.mubr.msk.bf16.vlgmr.msra.gmra.mrb[20].mxu1 %vm376_vm3, %v1644_v23 }
 0x177   :  { %3276 = vmatprep.mubr.msk.bf16.mxu1 %vm3612_vm0, %v3611_v0 }
 0x1c9   :  { %v348_v26 = vpop.f32.mrb[0].mxu1 }
 0x1ca   :  { %v3102_v27 = vpop.f32.mrb[1].mxu1 }
 0x1cb   :  { %v351_v28 = vpop.f32.mrb[2].mxu1 }
 0x1cc   :  { %v3103_v29 = vpop.f32.mrb[3].mxu1 }
 0x1d1   :  { %v280_v30 = vpop.f32.mrb[8].mxu0 }
 0x1d2   :  { %v3780_v31 = vadd.f32 %v348_v26, %v280_v30  ;;  %v3090_v32 = vpop.f32.mrb[9].mxu0 }
 0x1d3   :  { %v283_v33 = vpop.f32.mrb[10].mxu0 }
 0x1d4   :  { %v3091_v34 = vpop.f32.mrb[11].mxu0 }
 0x1d5   :  { %v3516_v34 = vld [vmem:[#allocation2 + $0xf0] sm:$0xff]  }
 0x1f1   :  { %v3128_v40 = vpop.f32.mrb[4].mxu1 }
 0x1f2   :  { %v630_v41 = vadd.f32 %v3128_v40, %v627_v39  ;;  %v583_v42 = vpop.f32.mrb[5].mxu1 }
 0x1f3   :  { %v628_v43 = vadd.f32 %v627_v39, %v583_v42  ;;  %v3129_v44 = vpop.f32.mrb[6].mxu1 }
 0x1f4   :  { %v631_v45 = vadd.f32 %v3129_v44, %v627_v39  ;;  %v586_v46 = vpop.f32.mrb[7].mxu1  ;;  %v638_v48 = vmax.f32 %v630_v41, 0.0 }
 0x1f5   :  { %v629_v47 = vadd.f32 %v627_v39, %v586_v46  ;;  %v636_v50 = vmax.f32 %v628_v43, 0.0 }
 0x1f6   :  { %v639_v49 = vmax.f32 %v631_v45, 0.0 }
 0x1f7   :  { %v637_v51 = vmax.f32 %v629_v47, 0.0  ;;  %v644_v9 = vpack.c.bf16 %v636_v50, %v3611_v0 }
 0x1f8   :  { %v651_v52 = vpack.c.bf16 %v639_v49, %v638_v48 }
 0x1f9   :  { %v645_v53 = vpack.c.bf16 %v638_v48, %v637_v51  ;;  %v650_v54 = vpack.c.bf16 %v637_v51, %v636_v50  ;;  %v3132_v55 = vpop.f32.mrb[8].mxu1  ;;  %v3517_v50 = vld [vmem:[#allocation2 + $0x100] sm:$0xff]   ;;  %v2822_v51 = vld [vmem:[%s3941_s2 + $0x28] sm:$0xff] }
 0x1fa   :  { %v634_v56 = vadd.f32 %v3132_v55, %v627_v39  ;;  %v599_v57 = vpop.f32.mrb[9].mxu1 }
 0x1fb   :  { %v632_v59 = vadd.f32 %v627_v39, %v599_v57  ;;  %v3133_v60 = vpop.f32.mrb[10].mxu1  ;;  %3136 = vmatprep.mubr.msk.bf16.mxu0 %vm376_vm3, %v650_v54 }
 0x1fc   :  { %v635_v61 = vadd.f32 %v3133_v60, %v627_v39  ;;  %v602_v62 = vpop.f32.mrb[11].mxu1  ;;  %3137 = vmatmul.mubr.msk.bf16.vlgmr.msra.gmra.mrb[12].mxu0 %vm376_vm3, %v651_v52  ;;  %v642_v2 = vmax.f32 %v634_v56, 0.0  ;;  %v1714_v52 = vrot.slane %v2822_v51, %v3782_v37  ;;  %v3518_v56 = vld [vmem:[#allocation2 + $0xf8] sm:$0xff]  }
 0x1fd   :  { %v640_v63 = vmax.f32 %v632_v59, 0.0  ;;  %v633_v1 = vadd.f32 %v627_v39, %v602_v62  ;;  %3145 = vmatpush3.bf16.msra.mxu0 %v3512_v25 }
 0x1fe   :  { %v643_v3 = vmax.f32 %v635_v61, 0.0  ;;  %3154 = vmatprep.subr.bf16.mxu0 %v3513_v58 }
 0x1ff   :  { %v646_v4 = vpack.c.bf16 %v640_v63, %v639_v49  ;;  %v641_v5 = vmax.f32 %v633_v1, 0.0 }
 0x200   :  { %v653_v6 = vpack.c.bf16 %v643_v3, %v642_v2  ;;  %v822_v15 = vpack.c.bf16 %v3611_v0, %v643_v3 }
 0x201   :  { %v647_v7 = vpack.c.bf16 %v642_v2, %v641_v5  ;;  %v652_v8 = vpack.c.bf16 %v641_v5, %v640_v63 }
 0x203   :  { %3140 = vmatprep.mubr.msk.bf16.mxu0 %vm376_vm3, %v652_v8 }
 0x204   :  { %3141 = vmatmul.mubr.msk.bf16.gmra.mrb[16].mxu0 %vm376_vm3, %v653_v6 }
 0x205   :  { %3146 = vmatprep.mubr.msk.bf16.mxu0 %vm376_vm3, %v644_v9  ;;  %v3520_v9 = vld [vmem:[#allocation2 + $0x110] sm:$0xff]  }
 0x20c   :  { %3147 = vmatmul.mubr.msk.bf16.vlgmr.msra.gmra.mrb[12].mxu0 %vm376_vm3, %v645_v53 }
 0x20d   :  { %3155 = vmatpush3.bf16.msra.mxu0 %v3513_v58  ;;  %3150 = vmatprep.mubr.msk.bf16.mxu0 %vm376_vm3, %v646_v4 }
 0x20e   :  { %3194 = vmatprep.subr.bf16.mxu0 %v3514_v10 }
 0x214   :  { %3151 = vmatmul.mubr.msk.bf16.gmra.mrb[16].mxu0 %vm376_vm3, %v647_v7 }
 0x215   :  { %3156 = vmatprep.mubr.msk.bf16.mxu0 %vm376_vm3, %v645_v53 }
 0x21c   :  { %3157 = vmatmul.mubr.msk.bf16.vlgmr.msra.gmra.mrb[12].mxu0 %vm376_vm3, %v646_v4 }
 0x21d   :  { %3195 = vmatpush3.bf16.msra.mxu0 %v3514_v10  ;;  %3160 = vmatprep.mubr.msk.bf16.mxu0 %vm376_vm3, %v647_v7  ;;  %v3519_v7 = vld [vmem:[#allocation2 + $0x108] sm:$0xff]  }
 0x21e   :  { %3204 = vmatprep.subr.bf16.mxu0 %v3515_v11 }
 0x221   :  { %v3188_v14 = vpop.f32.mrb[12].mxu1 }
 0x222   :  { %v1207_v16 = vadd.f32 %v3188_v14, %v1204_v13  ;;  %v1160_v17 = vpop.f32.mrb[13].mxu1  ;;  %v3524_v14 = vld [vmem:[#allocation2 + $0x130] sm:$0xff]  }
 0x223   :  { %v1205_v18 = vadd.f32 %v1204_v13, %v1160_v17  ;;  %v3189_v19 = vpop.f32.mrb[14].mxu1  ;;  %v3526_v17 = vld [vmem:[#allocation2 + $0x140] sm:$0xff]  }
 0x224   :  { %v1208_v20 = vadd.f32 %v3189_v19, %v1204_v13  ;;  %3161 = vmatmul.mubr.msk.bf16.gmra.mrb[16].mxu0 %vm376_vm3, %v822_v15  ;;  %v1163_v21 = vpop.f32.mrb[15].mxu1  ;;  %v1215_v23 = vmax.f32 %v1207_v16, 0.0  ;;  %v3525_v15 = vld [vmem:[#allocation2 + $0x138] sm:$0xff]   ;;  %v2748_v16 = vld [vmem:[%s3941_s2 + $0x10] sm:$0xff]  ;;  %v3527_v19 = vld [vmem:[#allocation2 + $0x148] sm:$0xff]  }
 0x225   :  { %v1206_v22 = vadd.f32 %v1204_v13, %v1163_v21  ;;  %v1213_v25 = vmax.f32 %v1205_v18, 0.0  ;;  %v356_v18 = vadd.f32 %v2748_v16, %v3780_v31  ;;  %v3530_v31 = vld [vmem:[#allocation2 + $0x160] sm:$0xff]  }
 0x226   :  { %v1216_v24 = vmax.f32 %v1208_v20, 0.0 }
 0x227   :  { %v1214_v26 = vmax.f32 %v1206_v22, 0.0  ;;  %v1221_v49 = vpack.c.bf16 %v1213_v25, %v3611_v0  ;;  %v357_v20 = vmax.f32 %v356_v18, 0.0  ;;  %v3528_v22 = vld [vmem:[#allocation2 + $0x150] sm:$0xff]  }
 0x228   :  { %v1228_v27 = vpack.c.bf16 %v1216_v24, %v1215_v23  ;;  %3261 = vmatpush3.bf16.msra.mxu1 %v3528_v22 }
 0x229   :  { %v1222_v28 = vpack.c.bf16 %v1215_v23, %v1214_v26  ;;  %v1227_v29 = vpack.c.bf16 %v1214_v26, %v1213_v25  ;;  %v3192_v30 = vpop.f32.mrb[16].mxu1  ;;  %v1936_v21 = vpack.c.bf16 %v357_v20, %v357_v20  ;;  %v3529_v23 = vld [vmem:[#allocation2 + $0x158] sm:$0xff]   ;;  %3262 = vmatprep.subr.bf16.mxu1 %v3611_v0  ;;  %v3532_v25 = vld [vmem:[#allocation2 + $0x170] sm:$0xff]  }
 0x22a   :  { %v1211_v32 = vadd.f32 %v3192_v30, %v1204_v13  ;;  %v1176_v33 = vpop.f32.mrb[17].mxu1  ;;  %v3533_v26 = vld [vmem:[#allocation2 + $0x178] sm:$0xff]   ;;  %v2780_v30 = vld [vmem:[%s3941_s2 + $0x30] sm:$0xff] }
 0x22b   :  { %v1209_v35 = vadd.f32 %v1204_v13, %v1176_v33  ;;  %v3193_v36 = vpop.f32.mrb[18].mxu1  ;;  %3196 = vmatprep.mubr.msk.bf16.mxu0 %vm376_vm3, %v1227_v29 }
 0x22c   :  { %v1212_v38 = vadd.f32 %v3193_v36, %v1204_v13  ;;  %v1179_v39 = vpop.f32.mrb[19].mxu1  ;;  %3197 = vmatmul.mubr.msk.bf16.vlgmr.msra.gmra.mrb[20].mxu0 %vm376_vm3, %v1228_v27  ;;  %v1219_v42 = vmax.f32 %v1211_v32, 0.0  ;;  %3263 = vmatpush3.bf16.msra.mxu1 %v3529_v23  ;;  %v3534_v27 = vld [vmem:[#allocation2 + $0x180] sm:$0xff]  }
 0x22d   :  { %v1217_v40 = vmax.f32 %v1209_v35, 0.0  ;;  %v1210_v41 = vadd.f32 %v1204_v13, %v1179_v39  ;;  %3205 = vmatpush3.bf16.msra.mxu0 %v3515_v11  ;;  %v3521_v11 = vld [vmem:[#allocation2 + $0x118] sm:$0xff]   ;;  %v3523_v13 = vld [vmem:[#allocation2 + $0x128] sm:$0xff]   ;;  %3264 = vmatprep.subr.bf16.mxu1 %v3611_v0 }
 0x22e   :  { %v1220_v43 = vmax.f32 %v1212_v38, 0.0  ;;  %3214 = vmatprep.subr.bf16.mxu0 %v3516_v34 }
 0x22f   :  { %v1223_v44 = vpack.c.bf16 %v1217_v40, %v1216_v24  ;;  %v1218_v45 = vmax.f32 %v1210_v41, 0.0  ;;  %v3531_v24 = vld [vmem:[#allocation2 + $0x168] sm:$0xff]  }
 0x230   :  { %v1230_v46 = vpack.c.bf16 %v1220_v43, %v1219_v42  ;;  %v1399_v6 = vpack.c.bf16 %v3611_v0, %v1220_v43  ;;  %3265 = vmatpush3.bf16.msra.mxu1 %v3530_v31 }
 0x231   :  { %v1224_v47 = vpack.c.bf16 %v1219_v42, %v1218_v45  ;;  %v1229_v48 = vpack.c.bf16 %v1218_v45, %v1217_v40  ;;  %3266 = vmatprep.subr.bf16.mxu1 %v3611_v0 }
 0x233   :  { %3200 = vmatprep.mubr.msk.bf16.mxu0 %vm376_vm3, %v1229_v48 }
 0x234   :  { %3201 = vmatmul.mubr.msk.bf16.gmra.mrb[24].mxu0 %vm376_vm3, %v1230_v46  ;;  %3267 = vmatpush3.bf16.msra.mxu1 %v3531_v24 }
 0x235   :  { %3206 = vmatprep.mubr.msk.bf16.mxu0 %vm376_vm3, %v1221_v49  ;;  %3268 = vmatprep.subr.bf16.mxu1 %v3611_v0 }
 0x238   :  { %3269 = vmatpush3.bf16.msra.mxu1 %v3532_v25 }
 0x239   :  { %3270 = vmatprep.subr.bf16.mxu1 %v3611_v0 }
 0x23c   :  { %3207 = vmatmul.mubr.msk.bf16.vlgmr.msra.gmra.mrb[20].mxu0 %vm376_vm3, %v1222_v28  ;;  %3271 = vmatpush3.bf16.msra.mxu1 %v3533_v26 }
 0x23d   :  { %3215 = vmatpush3.bf16.msra.mxu0 %v3516_v34  ;;  %3210 = vmatprep.mubr.msk.bf16.mxu0 %vm376_vm3, %v1223_v44  ;;  %v912_v34 = vrot.slane %v2780_v30, %v3782_v37 }
 0x23e   :  { %3242 = vmatprep.subr.bf16.mxu0 %v3517_v50  ;;  %3272 = vmatprep.subr.bf16.mxu1 %v3611_v0 }
 0x240   :  { %3273 = vmatpush3.bf16.msra.mxu1 %v3534_v27 }
 0x241   :  { %3274 = vmatprep.subr.bf16.mxu1 %v3611_v0 }
 0x244   :  { %3211 = vmatmul.mubr.msk.bf16.gmra.mrb[24].mxu0 %vm376_vm3, %v1224_v47 }
 0x245   :  { %3216 = vmatprep.mubr.msk.bf16.mxu0 %vm376_vm3, %v1222_v28  ;;  %v3535_v28 = vld [vmem:[#allocation2 + $0x188] sm:$0xff]  }
 0x246   :  { %3275 = vmatpush3.bf16.msra.mxu1 %v3535_v28 }
 0x247   :  { %3300 = vmatprep.subr.bf16.mxu1 %v3611_v0 }
 0x249   :  { %v3240_v53 = vpop.f32.mrb[20].mxu1 }
 0x24a   :  { %v1717_v54 = vadd.f32 %v3240_v53, %v1714_v52  ;;  %v1690_v55 = vpop.f32.mrb[21].mxu1 }
 0x24b   :  { %v1715_v57 = vadd.f32 %v1714_v52, %v1690_v55  ;;  %v3241_v58 = vpop.f32.mrb[22].mxu1 }
 0x24c   :  { %v1718_v59 = vadd.f32 %v3241_v58, %v1714_v52  ;;  %3217 = vmatmul.mubr.msk.bf16.vlgmr.msra.gmra.mrb[20].mxu0 %vm376_vm3, %v1223_v44  ;;  %v1693_v60 = vpop.f32.mrb[23].mxu1  ;;  %v1721_v62 = vmax.f32 %v1717_v54, 0.0 }
 0x24d   :  { %v1716_v61 = vadd.f32 %v1714_v52, %v1693_v60  ;;  %3243 = vmatpush3.bf16.msra.mxu0 %v3517_v50  ;;  %3220 = vmatprep.mubr.msk.bf16.mxu0 %vm376_vm3, %v1224_v47  ;;  %v1719_v1 = vmax.f32 %v1715_v57, 0.0 }
 0x24e   :  { %v1722_v63 = vmax.f32 %v1718_v59, 0.0  ;;  %3248 = vmatprep.subr.bf16.mxu0 %v3518_v56 }
 0x24f   :  { %v1720_v2 = vmax.f32 %v1716_v61, 0.0  ;;  %v1723_v8 = vpack.c.bf16 %v1719_v1, %v3611_v0 }
 0x250   :  { %v1728_v3 = vpack.c.bf16 %v1722_v63, %v1721_v62  ;;  %v1853_v10 = vpack.c.bf16 %v3611_v0, %v1722_v63 }
 0x251   :  { %v1724_v4 = vpack.c.bf16 %v1721_v62, %v1720_v2  ;;  %v1727_v5 = vpack.c.bf16 %v1720_v2, %v1719_v1  ;;  %v2812_v2 = vld [vmem:[%s3941_s2 + $0x38] sm:$0xff] }
 0x254   :  { %3221 = vmatmul.mubr.msk.bf16.gmra.mrb[24].mxu0 %vm376_vm3, %v1399_v6 }
 0x255   :  { %3244 = vmatprep.mubr.msk.bf16.mxu0 %vm376_vm3, %v1727_v5  ;;  %v1489_v5 = vrot.slane %v2812_v2, %v3782_v37  ;;  %v3543_v2 = vld [vmem:[#allocation2 + $0x1c8] sm:$0xff]  }
 0x25c   :  { %3245 = vmatmul.mubr.msk.bf16.vlgmr.msra.gmra.mrb[28].mxu0 %vm376_vm3, %v1728_v3 }
 0x25d   :  { %3249 = vmatpush3.bf16.msra.mxu0 %v3518_v56  ;;  %3250 = vmatprep.mubr.msk.bf16.mxu0 %vm376_vm3, %v1723_v8 }
 0x25e   :  { %3254 = vmatprep.subr.bf16.mxu0 %v3519_v7 }
 0x268   :  { %3251 = vmatmul.mubr.msk.bf16.vlgmr.msra.gmra.mrb[28].mxu0 %vm376_vm3, %v1724_v4 }
 0x269   :  { %3255 = vmatpush3.bf16.msra.mxu0 %v3519_v7  ;;  %3256 = vmatprep.mubr.msk.bf16.mxu0 %vm376_vm3, %v1724_v4 }
 0x26a   :  { %3280 = vmatprep.subr.bf16.mxu0 %v3611_v0 }
 0x274   :  { %3257 = vmatmul.mubr.msk.bf16.vlgmr.msra.gmra.mrb[28].mxu0 %vm376_vm3, %v1853_v10 }
 0x275   :  { %3281 = vmatpush3.bf16.msra.mxu0 %v3520_v9  ;;  %3296 = vmatprep.mubr.msk.bf16.mxu0 %vm3612_vm0, %v3611_v0 }
 0x276   :  { %3282 = vmatprep.subr.bf16.mxu0 %v3611_v0 }
 0x279   :  { %3283 = vmatpush3.bf16.msra.mxu0 %v3521_v11 }
 0x27a   :  { %3284 = vmatprep.subr.bf16.mxu0 %v3611_v0 }
 0x27d   :  { %3285 = vmatpush3.bf16.msra.mxu0 %v3522_v12 }
 0x27e   :  { %3286 = vmatprep.subr.bf16.mxu0 %v3611_v0 }
 0x281   :  { %3287 = vmatpush3.bf16.msra.mxu0 %v3523_v13 }
 0x282   :  { %3288 = vmatprep.subr.bf16.mxu0 %v3611_v0 }
 0x285   :  { %3289 = vmatpush3.bf16.msra.mxu0 %v3524_v14 }
 0x286   :  { %3290 = vmatprep.subr.bf16.mxu0 %v3611_v0 }
 0x289   :  { %3291 = vmatpush3.bf16.msra.mxu0 %v3525_v15 }
 0x28a   :  { %3292 = vmatprep.subr.bf16.mxu0 %v3611_v0 }
 0x28d   :  { %3293 = vmatpush3.bf16.msra.mxu0 %v3526_v17 }
 0x28e   :  { %3294 = vmatprep.subr.bf16.mxu0 %v3611_v0 }
 0x291   :  { %3295 = vmatpush3.bf16.msra.mxu0 %v3527_v19 }
 0x292   :  { %3320 = vmatprep.subr.bf16.mxu0 %v3611_v0 }
 0x294   :  { %3297 = vmatmul.mubr.bf16.vlgmr.msra.gmra.mrb[32].mxu0 %v1936_v21 }
 0x295   :  { %3336 = vmatprep.mubr.msk.bf16.mxu0 %vm3612_vm0, %v3611_v0 }
 0x2ef   :  { %v3158_v29 = vpop.f32.mrb[12].mxu0 }
 0x2f0   :  { %v868_v32 = vpop.f32.mrb[13].mxu0  ;;  %v915_v36 = vadd.f32 %v3158_v29, %v912_v34 }
 0x2f1   :  { %v3159_v33 = vpop.f32.mrb[14].mxu0  ;;  %v913_v38 = vadd.f32 %v912_v34, %v868_v32 }
 0x2f2   :  { %v871_v35 = vpop.f32.mrb[15].mxu0  ;;  %v916_v40 = vadd.f32 %v3159_v33, %v912_v34  ;;  %v923_v46 = vmax.f32 %v915_v36, 0.0 }
 0x2f3   :  { %v914_v43 = vadd.f32 %v912_v34, %v871_v35  ;;  %v921_v50 = vmax.f32 %v913_v38, 0.0  ;;  %v2832_v35 = vld [vmem:[%s3941_s2 + $0x40] sm:$0xff] }
 0x2f4   :  { %v924_v53 = vmax.f32 %v916_v40, 0.0  ;;  %v1923_v36 = vrot.slane %v2832_v35, %v3782_v37  ;;  %v3537_v37 = vld [vmem:[#allocation2 + $0x198] sm:$0xff]   ;;  %v3559_v35 = vld [vmem:[#allocation2 + $0x248] sm:$0xff]  }
 0x2f5   :  { %v922_v56 = vmax.f32 %v914_v43, 0.0 }
 0x2f7   :  { %v3162_v39 = vpop.f32.mrb[16].mxu0 }
 0x2f8   :  { %v919_v41 = vadd.f32 %v3162_v39, %v912_v34  ;;  %v884_v42 = vpop.f32.mrb[17].mxu0 }
 0x2f9   :  { %v917_v44 = vadd.f32 %v912_v34, %v884_v42  ;;  %v3163_v45 = vpop.f32.mrb[18].mxu0 }
 0x2fa   :  { %v927_v47 = vmax.f32 %v919_v41, 0.0  ;;  %v920_v48 = vadd.f32 %v3163_v45, %v912_v34  ;;  %v887_v49 = vpop.f32.mrb[19].mxu0 }
 0x2fb   :  { %v925_v51 = vmax.f32 %v917_v44, 0.0  ;;  %v918_v52 = vadd.f32 %v912_v34, %v887_v49 }
 0x2fc   :  { %v931_v54 = vmax.f32 %v923_v46, %v927_v47  ;;  %v928_v55 = vmax.f32 %v920_v48, 0.0 }
 0x2fd   :  { %v929_v57 = vmax.f32 %v921_v50, %v925_v51  ;;  %v926_v58 = vmax.f32 %v918_v52, 0.0 }
 0x2fe   :  { %v932_v59 = vmax.f32 %v924_v53, %v928_v55 }
 0x2ff   :  { %v933_v60 = vmax.f32 %v929_v57, %v931_v54  ;;  %v930_v61 = vmax.f32 %v922_v56, %v926_v58  ;;  %v3536_v54 = vld [vmem:[#allocation2 + $0x190] sm:$0xff]   ;;  %v3538_v56 = vld [vmem:[#allocation2 + $0x1a0] sm:$0xff]   ;;  %v3539_v57 = vld [vmem:[#allocation2 + $0x1a8] sm:$0xff]  }
 0x300   :  { %v3540_v58 = vld [vmem:[#allocation2 + $0x1b0] sm:$0xff]  }
 0x301   :  { %v934_v62 = vmax.f32 %v930_v61, %v932_v59  ;;  %v3541_v61 = vld [vmem:[#allocation2 + $0x1b8] sm:$0xff]  }
 0x303   :  { %v935_v63 = vmax.f32 %v933_v60, %v934_v62 }
 0x31f   :  { %v3218_v1 = vpop.f32.mrb[20].mxu0 }
 0x320   :  { %v1445_v3 = vpop.f32.mrb[21].mxu0  ;;  %v1492_v7 = vadd.f32 %v3218_v1, %v1489_v5  ;;  %v3542_v1 = vld [vmem:[#allocation2 + $0x1c0] sm:$0xff]  }
 0x321   :  { %v3219_v4 = vpop.f32.mrb[22].mxu0  ;;  %v1490_v8 = vadd.f32 %v1489_v5, %v1445_v3  ;;  %v3544_v3 = vld [vmem:[#allocation2 + $0x1d0] sm:$0xff]  }
 0x322   :  { %v1448_v6 = vpop.f32.mrb[23].mxu0  ;;  %v1493_v10 = vadd.f32 %v3219_v4, %v1489_v5  ;;  %v1500_v16 = vmax.f32 %v1492_v7, 0.0  ;;  %3321 = vmatpush3.bf16.msra.mxu0 %v3544_v3  ;;  %v3545_v4 = vld [vmem:[#allocation2 + $0x1d8] sm:$0xff]   ;;  %v3548_v7 = vld [vmem:[#allocation2 + $0x1f0] sm:$0xff]   ;;  %v3574_v3 = vld [vmem:[#allocation2 + $0x2c0] sm:$0xff]  }
 0x323   :  { %v1491_v13 = vadd.f32 %v1489_v5, %v1448_v6  ;;  %v1498_v20 = vmax.f32 %v1490_v8, 0.0  ;;  %3322 = vmatprep.subr.bf16.mxu0 %v3611_v0  ;;  %v3547_v6 = vld [vmem:[#allocation2 + $0x1e8] sm:$0xff]   ;;  %v3549_v8 = vld [vmem:[#allocation2 + $0x1f8] sm:$0xff]  }
 0x324   :  { %v1501_v23 = vmax.f32 %v1493_v10, 0.0  ;;  %v2849_v10 = vld [vmem:[%s3941_s2 + $0x48] sm:$0xff] }
 0x325   :  { %v1499_v25 = vmax.f32 %v1491_v13, 0.0 }
 0x326   :  { %3323 = vmatpush3.bf16.msra.mxu0 %v3545_v4  ;;  %v3575_v4 = vld [vmem:[#allocation2 + $0x2c8] sm:$0xff]  }
 0x327   :  { %v3222_v9 = vpop.f32.mrb[24].mxu0  ;;  %3324 = vmatprep.subr.bf16.mxu0 %v3611_v0 }
 0x328   :  { %v1496_v11 = vadd.f32 %v3222_v9, %v1489_v5  ;;  %v1461_v12 = vpop.f32.mrb[25].mxu0 }
 0x329   :  { %v1494_v14 = vadd.f32 %v1489_v5, %v1461_v12  ;;  %v3223_v15 = vpop.f32.mrb[26].mxu0 }
 0x32a   :  { %v1504_v17 = vmax.f32 %v1496_v11, 0.0  ;;  %v1497_v18 = vadd.f32 %v3223_v15, %v1489_v5  ;;  %v1464_v19 = vpop.f32.mrb[27].mxu0 }
 0x32b   :  { %v1502_v21 = vmax.f32 %v1494_v14, 0.0  ;;  %v1495_v22 = vadd.f32 %v1489_v5, %v1464_v19  ;;  %v3546_v5 = vld [vmem:[#allocation2 + $0x1e0] sm:$0xff]   ;;  %v3551_v19 = vld [vmem:[#allocation2 + $0x208] sm:$0xff]  }
 0x32c   :  { %v1508_v31 = vmax.f32 %v1500_v16, %v1504_v17  ;;  %v1505_v24 = vmax.f32 %v1497_v18, 0.0  ;;  %3325 = vmatpush3.bf16.msra.mxu0 %v3546_v5  ;;  %v3550_v18 = vld [vmem:[#allocation2 + $0x200] sm:$0xff]   ;;  %v2877_v5 = vld [vmem:[%s3941_s2 + $0x68] sm:$0xff] }
 0x32d   :  { %v1506_v26 = vmax.f32 %v1498_v20, %v1502_v21  ;;  %v1503_v27 = vmax.f32 %v1495_v22, 0.0  ;;  %3326 = vmatprep.subr.bf16.mxu0 %v3611_v0  ;;  %v3552_v20 = vld [vmem:[#allocation2 + $0x210] sm:$0xff]   ;;  %v3553_v21 = vld [vmem:[#allocation2 + $0x218] sm:$0xff]   ;;  %v3554_v22 = vld [vmem:[#allocation2 + $0x220] sm:$0xff]  }
 0x32e   :  { %v1509_v28 = vmax.f32 %v1501_v23, %v1505_v24  ;;  %v3555_v23 = vld [vmem:[#allocation2 + $0x228] sm:$0xff]   ;;  %v3557_v24 = vld [vmem:[#allocation2 + $0x238] sm:$0xff]  }
 0x32f   :  { %v1510_v29 = vmax.f32 %v1506_v26, %v1508_v31  ;;  %v1507_v30 = vmax.f32 %v1499_v25, %v1503_v27  ;;  %v3556_v31 = vld [vmem:[#allocation2 + $0x230] sm:$0xff]  }
 0x330   :  { %3327 = vmatpush3.bf16.msra.mxu0 %v3547_v6  ;;  %v2850_v25 = vld [vmem:[%s3941_s2 + $0x50] sm:$0xff] }
 0x331   :  { %v1511_v32 = vmax.f32 %v1507_v30, %v1509_v28  ;;  %3328 = vmatprep.subr.bf16.mxu0 %v3611_v0 }
 0x333   :  { %v1512_v33 = vmax.f32 %v1510_v29, %v1511_v32 }
 0x334   :  { %3329 = vmatpush3.bf16.msra.mxu0 %v3548_v7 }
 0x335   :  { %v1513_v34 = vadd.f32 %v1512_v33, %v935_v63  ;;  %3330 = vmatprep.subr.bf16.mxu0 %v3611_v0 }
 0x338   :  { %3331 = vmatpush3.bf16.msra.mxu0 %v3549_v8 }
 0x339   :  { %3332 = vmatprep.subr.bf16.mxu0 %v3611_v0 }
 0x33c   :  { %3333 = vmatpush3.bf16.msra.mxu0 %v3550_v18 }
 0x33d   :  { %3334 = vmatprep.subr.bf16.mxu0 %v3611_v0 }
 0x340   :  { %3335 = vmatpush3.bf16.msra.mxu0 %v3551_v19 }
 0x341   :  { %3360 = vmatprep.subr.bf16.mxu0 %v3611_v0 }
 0x347   :  { %v3258_v38 = vpop.f32.mrb[28].mxu0 }
 0x348   :  { %v1926_v39 = vadd.f32 %v3258_v38, %v1923_v36  ;;  %v1899_v40 = vpop.f32.mrb[29].mxu0  ;;  %v3561_v38 = vld [vmem:[#allocation2 + $0x258] sm:$0xff]  }
 0x349   :  { %v1924_v41 = vadd.f32 %v1923_v36, %v1899_v40  ;;  %v3259_v42 = vpop.f32.mrb[30].mxu0  ;;  %v3563_v40 = vld [vmem:[#allocation2 + $0x268] sm:$0xff]  }
 0x34a   :  { %v1930_v43 = vmax.f32 %v1926_v39, 0.0  ;;  %v1927_v44 = vadd.f32 %v3259_v42, %v1923_v36  ;;  %v1902_v45 = vpop.f32.mrb[31].mxu0  ;;  %v3562_v39 = vld [vmem:[#allocation2 + $0x260] sm:$0xff]   ;;  %v3565_v42 = vld [vmem:[#allocation2 + $0x278] sm:$0xff]  }
 0x34b   :  { %v1928_v46 = vmax.f32 %v1924_v41, 0.0  ;;  %v1925_v47 = vadd.f32 %v1923_v36, %v1902_v45  ;;  %v3560_v36 = vld [vmem:[#allocation2 + $0x250] sm:$0xff]  }
 0x34c   :  { %v1931_v48 = vmax.f32 %v1927_v44, 0.0  ;;  %v3564_v41 = vld [vmem:[#allocation2 + $0x270] sm:$0xff]  }
 0x34d   :  { %v1932_v49 = vmax.f32 %v1928_v46, %v1930_v43  ;;  %v1929_v50 = vmax.f32 %v1925_v47, 0.0  ;;  %v2859_v43 = vld [vmem:[%s3941_s2 + $0x58] sm:$0xff] }
 0x34f   :  { %v1933_v51 = vmax.f32 %v1929_v50, %v1931_v48 }
 0x351   :  { %v1934_v52 = vmax.f32 %v1932_v49, %v1933_v51  ;;  %v3566_v51 = vld [vmem:[#allocation2 + $0x280] sm:$0xff]  }
 0x353   :  { %v1935_v53 = vadd.f32 %v1934_v52, %v1513_v34  ;;  %v3558_v34 = vld [vmem:[#allocation2 + $0x240] sm:$0xff]   ;;  %v3567_v52 = vld [vmem:[#allocation2 + $0x288] sm:$0xff]  }
 0x355   :  { %v1953_v55 = vpack.c.bf16 %v1935_v53, %v1935_v53  ;;  %v3568_v53 = vld [vmem:[#allocation2 + $0x290] sm:$0xff]  }
 0x357   :  { %3277 = vmatmul.mubr.bf16.vlgmr.msra.gmra.mrb[24].mxu1 %v1953_v55  ;;  %v3570_v55 = vld [vmem:[#allocation2 + $0x2a0] sm:$0xff]  }
 0x358   :  { %3301 = vmatpush3.bf16.msra.mxu1 %v3536_v54  ;;  %3316 = vmatprep.mubr.msk.bf16.mxu1 %vm3612_vm0, %v3611_v0  ;;  %v3569_v54 = vld [vmem:[#allocation2 + $0x298] sm:$0xff]  }
 0x359   :  { %3302 = vmatprep.subr.bf16.mxu1 %v3611_v0 }
 0x35c   :  { %3303 = vmatpush3.bf16.msra.mxu1 %v3537_v37  ;;  %v3571_v37 = vld [vmem:[#allocation2 + $0x2a8] sm:$0xff]  }
 0x35d   :  { %3304 = vmatprep.subr.bf16.mxu1 %v3611_v0 }
 0x360   :  { %3305 = vmatpush3.bf16.msra.mxu1 %v3538_v56  ;;  %v3572_v56 = vld [vmem:[#allocation2 + $0x2b0] sm:$0xff]  }
 0x361   :  { %3306 = vmatprep.subr.bf16.mxu1 %v3611_v0 }
 0x364   :  { %3307 = vmatpush3.bf16.msra.mxu1 %v3539_v57  ;;  %v3573_v57 = vld [vmem:[#allocation2 + $0x2b8] sm:$0xff]  }
 0x365   :  { %3308 = vmatprep.subr.bf16.mxu1 %v3611_v0 }
 0x367   :  { %v2140_v59 = vpop.f32.mrb[32].mxu0 }
 0x368   :  { %v3298_v60 = vpop.f32.mrb[33].mxu0  ;;  %3309 = vmatpush3.bf16.msra.mxu1 %v3540_v58  ;;  %v2868_v58 = vld [vmem:[%s3941_s2 + $0x60] sm:$0xff] }
 0x369   :  { %v2143_v62 = vpop.f32.mrb[34].mxu0  ;;  %3310 = vmatprep.subr.bf16.mxu1 %v3611_v0 }
 0x36a   :  { %v3299_v63 = vpop.f32.mrb[35].mxu0 }
 0x36c   :  { %3311 = vmatpush3.bf16.msra.mxu1 %v3541_v61 }
 0x36d   :  { %3312 = vmatprep.subr.bf16.mxu1 %v3611_v0 }
 0x370   :  { %3313 = vmatpush3.bf16.msra.mxu1 %v3542_v1 }
 0x371   :  { %3314 = vmatprep.subr.bf16.mxu1 %v3611_v0 }
 0x374   :  { %3315 = vmatpush3.bf16.msra.mxu1 %v3543_v2 }
 0x375   :  { %3340 = vmatprep.subr.bf16.mxu1 %v3611_v0 }
 0x42a   :  { %v2052_v9 = vpop.f32.mrb[24].mxu1 }
 0x42b   :  { %v2141_v11 = vadd.f32 %v2140_v59, %v2052_v9  ;;  %v3278_v12 = vpop.f32.mrb[25].mxu1 }
 0x42c   :  { %v2055_v13 = vpop.f32.mrb[26].mxu1 }
 0x42d   :  { %v2148_v14 = vadd.f32 %v2849_v10, %v2141_v11  ;;  %v3279_v15 = vpop.f32.mrb[27].mxu1  ;;  %v2886_v13 = vld [vmem:[%s3941_s2 + $0x70] sm:$0xff] }
 0x42f   :  { %v2149_v16 = vmax.f32 %v2148_v14, 0.0 }
 0x431   :  { %v2150_v17 = vpack.c.bf16 %v2149_v16, %v2149_v16 }
 0x433   :  { %3317 = vmatmul.mubr.bf16.vlgmr.msra.gmra.mrb[28].mxu1 %v2150_v17 }
 0x434   :  { %3356 = vmatprep.mubr.msk.bf16.mxu1 %vm3612_vm0, %v3611_v0  ;;  %3341 = vmatpush3.bf16.msra.mxu1 %v3552_v20 }
 0x435   :  { %3342 = vmatprep.subr.bf16.mxu1 %v3611_v0 }
 0x438   :  { %3343 = vmatpush3.bf16.msra.mxu1 %v3553_v21 }
 0x439   :  { %3344 = vmatprep.subr.bf16.mxu1 %v3611_v0 }
 0x43c   :  { %3345 = vmatpush3.bf16.msra.mxu1 %v3554_v22 }
 0x43d   :  { %3346 = vmatprep.subr.bf16.mxu1 %v3611_v0 }
 0x440   :  { %3347 = vmatpush3.bf16.msra.mxu1 %v3555_v23 }
 0x441   :  { %3348 = vmatprep.subr.bf16.mxu1 %v3611_v0 }
 0x444   :  { %3349 = vmatpush3.bf16.msra.mxu1 %v3556_v31 }
 0x445   :  { %3350 = vmatprep.subr.bf16.mxu1 %v3611_v0 }
 0x448   :  { %3351 = vmatpush3.bf16.msra.mxu1 %v3557_v24 }
 0x449   :  { %3352 = vmatprep.subr.bf16.mxu1 %v3611_v0 }
 0x44c   :  { %3353 = vmatpush3.bf16.msra.mxu1 %v3558_v34 }
 0x44d   :  { %3354 = vmatprep.subr.bf16.mxu1 %v3611_v0 }
 0x450   :  { %3355 = vmatpush3.bf16.msra.mxu1 %v3559_v35 }
 0x451   :  { %3380 = vmatprep.subr.bf16.mxu1 %v3611_v0 }
 0x506   :  { %v2251_v26 = vpop.f32.mrb[28].mxu1 }
 0x507   :  { %v2252_v27 = vadd.f32 %v2850_v25, %v2251_v26  ;;  %v3318_v28 = vpop.f32.mrb[29].mxu1 }
 0x508   :  { %v2254_v29 = vpop.f32.mrb[30].mxu1 }
 0x509   :  { %v2257_v30 = vmax.f32 %v2252_v27, 0.0  ;;  %v3319_v32 = vpop.f32.mrb[31].mxu1 }
 0x50b   :  { %v2258_v33 = vpack.c.bf16 %v2257_v30, %v2257_v30 }
 0x50d   :  { %3337 = vmatmul.mubr.bf16.vlgmr.msra.gmra.mrb[36].mxu0 %v2258_v33 }
 0x50e   :  { %3376 = vmatprep.mubr.msk.bf16.mxu0 %vm3612_vm0, %v3611_v0  ;;  %3361 = vmatpush3.bf16.msra.mxu0 %v3560_v36 }
 0x50f   :  { %3362 = vmatprep.subr.bf16.mxu0 %v3611_v0 }
 0x512   :  { %3363 = vmatpush3.bf16.msra.mxu0 %v3561_v38 }
 0x513   :  { %3364 = vmatprep.subr.bf16.mxu0 %v3611_v0 }
 0x516   :  { %3365 = vmatpush3.bf16.msra.mxu0 %v3562_v39 }
 0x517   :  { %3366 = vmatprep.subr.bf16.mxu0 %v3611_v0 }
 0x51a   :  { %3367 = vmatpush3.bf16.msra.mxu0 %v3563_v40 }
 0x51b   :  { %3368 = vmatprep.subr.bf16.mxu0 %v3611_v0 }
 0x51e   :  { %3369 = vmatpush3.bf16.msra.mxu0 %v3564_v41 }
 0x51f   :  { %3370 = vmatprep.subr.bf16.mxu0 %v3611_v0 }
 0x522   :  { %3371 = vmatpush3.bf16.msra.mxu0 %v3565_v42 }
 0x523   :  { %3372 = vmatprep.subr.bf16.mxu0 %v3611_v0 }
 0x526   :  { %3373 = vmatpush3.bf16.msra.mxu0 %v3566_v51 }
 0x527   :  { %3374 = vmatprep.subr.bf16.mxu0 %v3611_v0 }
 0x52a   :  { %3375 = vmatpush3.bf16.msra.mxu0 %v3567_v52 }
 0x5e0   :  { %v2359_v44 = vpop.f32.mrb[36].mxu0 }
 0x5e1   :  { %v2360_v45 = vadd.f32 %v2859_v43, %v2359_v44  ;;  %v3338_v46 = vpop.f32.mrb[37].mxu0 }
 0x5e2   :  { %v2362_v47 = vpop.f32.mrb[38].mxu0 }
 0x5e3   :  { %v2365_v48 = vmax.f32 %v2360_v45, 0.0  ;;  %v3339_v49 = vpop.f32.mrb[39].mxu0 }
 0x5e5   :  { %v2366_v50 = vpack.c.bf16 %v2365_v48, %v2365_v48 }
 0x5e7   :  { %3357 = vmatmul.mubr.bf16.vlgmr.msra.gmra.mrb[32].mxu1 %v2366_v50 }
 0x5e8   :  { %3396 = vmatprep.mubr.msk.bf16.mxu1 %vm3612_vm0, %v3611_v0  ;;  %3381 = vmatpush3.bf16.msra.mxu1 %v3568_v53 }
 0x5e9   :  { %3382 = vmatprep.subr.bf16.mxu1 %v3611_v0 }
 0x5ec   :  { %3383 = vmatpush3.bf16.msra.mxu1 %v3569_v54 }
 0x5ed   :  { %3384 = vmatprep.subr.bf16.mxu1 %v3611_v0 }
 0x5f0   :  { %3385 = vmatpush3.bf16.msra.mxu1 %v3570_v55 }
 0x5f1   :  { %3386 = vmatprep.subr.bf16.mxu1 %v3611_v0 }
 0x5f4   :  { %3387 = vmatpush3.bf16.msra.mxu1 %v3571_v37 }
 0x5f5   :  { %3388 = vmatprep.subr.bf16.mxu1 %v3611_v0 }
 0x5f8   :  { %3389 = vmatpush3.bf16.msra.mxu1 %v3572_v56 }
 0x5f9   :  { %3390 = vmatprep.subr.bf16.mxu1 %v3611_v0 }
 0x5fc   :  { %3391 = vmatpush3.bf16.msra.mxu1 %v3573_v57 }
 0x5fd   :  { %3392 = vmatprep.subr.bf16.mxu1 %v3611_v0 }
 0x600   :  { %3393 = vmatpush3.bf16.msra.mxu1 %v3574_v3 }
 0x601   :  { %3394 = vmatprep.subr.bf16.mxu1 %v3611_v0 }
 0x604   :  { %3395 = vmatpush3.bf16.msra.mxu1 %v3575_v4 }
 0x6ba   :  { %v2467_v59 = vpop.f32.mrb[32].mxu1 }
 0x6bb   :  { %v2468_v60 = vadd.f32 %v2868_v58, %v2467_v59  ;;  %v3358_v61 = vpop.f32.mrb[33].mxu1 }
 0x6bc   :  { %v2470_v62 = vpop.f32.mrb[34].mxu1 }
 0x6bd   :  { %v2473_v63 = vmax.f32 %v2468_v60, 0.0  ;;  %v3359_v1 = vpop.f32.mrb[35].mxu1 }
 0x6bf   :  { %v2474_v2 = vpack.c.bf16 %v2473_v63, %v2473_v63 }
 0x6c1   :  { %3377 = vmatmul.mubr.bf16.vlgmr.msra.gmra.mrb[40].mxu0 %v2474_v2 }
 0x794   :  { %v2575_v6 = vpop.f32.mrb[40].mxu0 }
 0x795   :  { %v2576_v7 = vadd.f32 %v2877_v5, %v2575_v6  ;;  %v3378_v8 = vpop.f32.mrb[41].mxu0 }
 0x796   :  { %v2578_v9 = vpop.f32.mrb[42].mxu0 }
 0x797   :  { %v2581_v10 = vmax.f32 %v2576_v7, 0.0  ;;  %v3379_v11 = vpop.f32.mrb[43].mxu0 }
 0x799   :  { %v2582_v12 = vpack.c.bf16 %v2581_v10, %v2581_v10 }
 0x79b   :  { %3397 = vmatmul.mubr.bf16.vlgmr.msra.gmra.mrb[36].mxu1 %v2582_v12 }
 0x86e   :  { %v2683_v14 = vpop.f32.mrb[36].mxu1 }
 0x86f   :  { %v2684_v0 = vadd.f32 %v2886_v13, %v2683_v14  ;;  %v3398_v15 = vpop.f32.mrb[37].mxu1 }
 0x870   :  { %v2686_v16 = vpop.f32.mrb[38].mxu1 }
 0x871   :  { %v3399_v17 = vpop.f32.mrb[39].mxu1  ;;  %v2703_v18 = vsel %vm2702_vm4, %v2684_v0, -inf  ;;  %v2690_v19 = vsel %vm2689_vm5, %v2684_v0, -inf }
 0x872   :  { %2704 = vmax.xlane.f32.xlu0 %v2703_v18 }
 0x876   :  { %2691 = vmax.xlane.f32.xlu0 %v2690_v19 }
 0x8ff   :  { %v2705_v20 = vpop.xlane.xlu0 %2704 }
 0x900   :  { %v2706_v21 = vsub.f32 %v2684_v0, %v2705_v20 }
 0x902   :  { %v2707_v22 = vmul.f32 1.442695, %v2706_v21 }
 0x903   :  { %v2692_v31 = vpop.xlane.xlu0 %2691 }
 0x904   :  { %3576 = vpow2.f32 %v2707_v22  ;;  %v2693_v24 = vsub.f32 %v2684_v0, %v2692_v31 }
 0x906   :  { %v2694_v25 = vmul.f32 1.442695, %v2693_v24 }
 0x908   :  { %3578 = vpow2.f32 %v2694_v25 }
 0x90e   :  { %v3577_v23 = vpop.eup %3576 }
 0x90f   :  { %2710 = vrot.lane.b32.xlu1 %v3577_v23, %s3613_s13 }
 0x912   :  { %v3579_v26 = vpop.eup %3578 }
 0x913   :  { %v2696_v27 = vsel %vm2689_vm5, %v3579_v26, 0.0 }
 0x933   :  { %2697 = vadd.xlane.f32.xlu1 %v2696_v27 }
 0x981   :  { %v2711_v28 = vpop.permute.xlu1 %2710 }
 0x982   :  { %v2714_v29 = vsel %vm2713_vm6, %v2711_v28, 0.0 }
 0x983   :  { %2715 = vadd.xlane.f32.xlu0 %v2714_v29 }
 0x9c0   :  { %v2698_v30 = vpop.xlane.xlu1 %2697 }
 0x9c1   :  { %3580 = vlog2.f32 %v2698_v30 }
 0x9cb   :  { %v3581_v33 = vpop.eup %3580 }
 0x9cc   :  { %v2700_v34 = vmul.f32 0.6931472, %v3581_v33 }
 0x9ce   :  { %v2701_v36 = vsub.f32 %v2693_v24, %v2700_v34 }
 0xa10   :  { %v2716_v32 = vpop.xlane.xlu0 %2715 }
 0xa11   :  { %3582 = vrcp.f32 %v2716_v32 }
 0xa1b   :  { %v3583_v35 = vpop.eup %3582 }
 0xa1c   :  { %v2718_v38 = vmul.f32 %v3583_v35, %v3577_v23 }
 0xa1e   :  { %v2719_v39 = vsel %vm2689_vm5, %v2701_v36, %v2718_v38 }
 0xa1f   :  { %v2721_v40 = vsel %vm2720_vm7, %v2719_v39, 0.0 }
 0xa20   :  { %2722 = vst [vmem:[%s3942_s3] sm:$0xff] %v2721_v40 }
 0xa21   :  { %2727 = vsyncpa [#allocation3], 1 }

</bundles_post_ra>
